<compile_context>
chip_gen: v6e
topology: v6e:2x2x1
jax: 0.10.0
libtpu: 0.0.40
codegen_flags: <defaults>
</compile_context>

<pallas_src>
import functools
import numpy as np
import jax
import jax.numpy as jnp
from jax.experimental import pallas as pl
from jax.experimental.pallas import tpu as pltpu

# ----------------------------- configuration -------------------------------
FEATURES = 8          # teacher_kwargs["features"]
HIDDEN = 32           # teacher_kwargs["hidden_features"]
NUM_BLOCKS = 2        # nflows default num_blocks (residual blocks)
BATCH = 8
EPS = 1e-3            # MaskedAffineAutoregressiveTransform._epsilon


# ------------------------------ mask building ------------------------------
def _input_degrees(f):
    return np.arange(1, f + 1)


def _hidden_degrees(f, h):
    max_ = max(1, f - 1)
    min_ = min(1, f - 1)
    return np.arange(h) % max_ + min_


def build_masks(f, h):
    """Masks stored transposed, shape (in, out), matching x @ W layout."""
    in_deg = _input_degrees(f)
    hid_deg = _hidden_degrees(f, h)
    # initial MaskedLinear (f -> h): mask = hidden_deg >= input_deg
    m0 = (hid_deg[None, :] >= in_deg[:, None]).astype(np.float32)   # (f, h)
    # hidden MaskedLinear (h -> h)
    mh = (hid_deg[None, :] >= hid_deg[:, None]).astype(np.float32)  # (h, h)
    # final MaskedLinear (is_output=True, strict inequality): (h -> f)
    mf = (in_deg[None, :] > hid_deg[:, None]).astype(np.float32)    # (h, f)
    return m0, mh, mf


# --------------------------- parameter creation -----------------------------
def init_params(key, f, h, num_blocks):
    m0, mh, mf = build_masks(f, h)
    keys = jax.random.split(key, 4 + 4 * num_blocks)
    ki = iter(keys)

    def unif(k, shape, fan_in):
        bound = 1.0 / np.sqrt(fan_in)
        return jax.random.uniform(k, shape, jnp.float32, -bound, bound)

    w0 = unif(next(ki), (f, h), f) * m0
    b0 = unif(next(ki), (1, h), f)

    blocks = []
    for _ in range(2 * num_blocks):
        w = unif(next(ki), (h, h), h) * mh
        b = unif(next(ki), (1, h), h)
        blocks.append((w, b))

    # Fused final layer, columns ordered [shift | uscale] (same mask for both
    # halves; mathematically equivalent parameterization to nflows' 2*f).
    mff = np.concatenate([mf, mf], axis=1)                          # (h, 2f)
    wss = unif(next(ki), (h, 2 * f), h) * mff
    bss = unif(next(ki), (1, 2 * f), h)
    return dict(w0=w0, b0=b0, blocks=blocks, wss=wss, bss=bss)


# ------------------------- shared math helpers -------------------------------
def _softplus(v):
    # numerically stable softplus that lowers cleanly on Mosaic
    return jnp.log1p(jnp.exp(-jnp.abs(v))) + jnp.maximum(v, 0.0)


# --------------------------- parameter packing --------------------------------
def pack_params(params, f=FEATURES, h=HIDDEN, num_blocks=NUM_BLOCKS, eps=EPS):
    """Pack all weights/biases into two f32 slabs and fold the z=0 first MADE
    pass (shift0, 1/scale0) into the bias slab.  Re-run whenever params change.

      weight slab (f + 2*nb*h + h, h):
          rows [0:f)                     w0
          rows [f + i*h : f + (i+1)*h)   block weight i  (i = 0 .. 2*nb-1)
          last h rows                    fused output layer, zero-padded to h cols
      bias slab (2*nb + 4, h):
          row 0            b0
          rows 1..2*nb     block biases
          row 2*nb+1       fused output bias (zero-padded)
          row 2*nb+2       shift0   (iteration-0 fold, zero-padded)
          row 2*nb+3       1/scale0 (iteration-0 fold, zero-padded)
    """
    w0, b0 = params["w0"], params["b0"]
    blocks = params["blocks"]
    wss, bss = params["wss"], params["bss"]          # (h, 2f), (1, 2f)

    # --- fold iteration 0 (z = 0): MADE(0) depends only on params -----------
    hh = b0                                          # 0 @ w0 + b0
    for i in range(num_blocks):
        wa, ba = blocks[2 * i]
        wb, bb = blocks[2 * i + 1]
        t = jnp.maximum(hh, 0.0) @ wa + ba
        t = jnp.maximum(t, 0.0) @ wb + bb
        hh = hh + t
    ss0 = hh @ wss + bss
    shift0 = ss0[:, :f]
    scale0 = _softplus(ss0[:, f:]) + eps
    inv_scale0 = 1.0 / scale0                        # exact divide, done once

    pad_cols = lambda v: jnp.pad(v, ((0, 0), (0, h - v.shape[1])))

    w_rows = [w0] + [w for (w, _) in blocks] + [pad_cols(wss)]
    wslab = jnp.concatenate(w_rows, axis=0).astype(jnp.float32)

    b_rows = ([b0] + [b for (_, b) in blocks]
              + [pad_cols(bss), pad_cols(shift0), pad_cols(inv_scale0)])
    bslab = jnp.concatenate(b_rows, axis=0).astype(jnp.float32)
    return wslab, bslab


# -------------------------------- kernel ------------------------------------
def maf_inverse_kernel(x_ref, w_ref, b_ref, z_ref, lad_ref, *,
                       num_blocks, features, hidden, batch_block, eps):
    F, H, B = features, hidden, batch_block
    x = x_ref[...]                                           # (B, F)

    # --- carve weight views out of the packed slab (static, aligned slices) --
    w0 = w_ref[0:F, :]                                       # (F, H)
    row = F
    blk_w = []
    for _ in range(2 * num_blocks):
        blk_w.append(w_ref[row:row + H, :])                  # (H, H)
        row += H
    wss = w_ref[row:row + H, :]                              # (H, H) zero-padded

    # --- bias rows: hoist (B, H) broadcasts once, reuse every iteration ------
    b0 = jnp.broadcast_to(b_ref[0:1, :], (B, H))
    blk_b = [jnp.broadcast_to(b_ref[i + 1:i + 2, :], (B, H))
             for i in range(2 * num_blocks)]
    bss = jnp.broadcast_to(b_ref[2 * num_blocks + 1:2 * num_blocks + 2, :], (B, H))
    shift0 = jnp.broadcast_to(b_ref[2 * num_blocks + 2:2 * num_blocks + 3, 0:F], (B, F))
    inv_scale0 = jnp.broadcast_to(b_ref[2 * num_blocks + 3:2 * num_blocks + 4, 0:F], (B, F))

    def made(z):
        # MADE: masked initial layer -> residual blocks -> fused output layer
        h = jnp.dot(z, w0, preferred_element_type=jnp.float32) + b0
        for i in range(num_blocks):
            wa, ba = blk_w[2 * i], blk_b[2 * i]
            wb, bb = blk_w[2 * i + 1], blk_b[2 * i + 1]
            t = jnp.maximum(h, 0.0)
            t = jnp.dot(t, wa, preferred_element_type=jnp.float32) + ba
            t = jnp.maximum(t, 0.0)
            t = jnp.dot(t, wb, preferred_element_type=jnp.float32) + bb
            h = h + t
        ss = jnp.dot(h, wss, preferred_element_type=jnp.float32) + bss   # (B, H)
        return ss[:, 0:F], ss[:, F:2 * F]                    # (shift, uscale)

    # --- iteration 0 is constant-folded into the bias slab -------------------
    z = (x - shift0) * inv_scale0

    # --- statically unrolled autoregressive inverse loop (iterations 1..F-1) -
    scale = None
    for _ in range(features - 1):
        shift, uscale = made(z)
        scale = _softplus(uscale) + eps
        r = pl.reciprocal(scale, approx=True)                # EUP vrcp fast path
        r = r * (2.0 - scale * r)                            # one Newton step
        z = (x - shift) * r

    z_ref[...] = z
    # logabsdet only from the final iteration (matches nflows MAF inverse)
    lad_ref[...] = -jnp.sum(jnp.log(scale), axis=-1, keepdims=True)


# -------------------------------- wrapper ------------------------------------
def student_forward(x, wslab, bslab, *, features=FEATURES, hidden=HIDDEN,
                    num_blocks=NUM_BLOCKS, batch_block=None):
    b, f = x.shape
    assert f == features and features >= 2

    # batch block: multiple of 8 (sublane), capped at 128 (MXU M depth)
    if batch_block is None:
        batch_block = min(128, ((b + 7) // 8) * 8)
    bb = batch_block
    b_pad = ((b + bb - 1) // bb) * bb
    x_p = x if b_pad == b else jnp.zeros((b_pad, f), x.dtype).at[:b].set(x)

    kernel = functools.partial(maf_inverse_kernel, num_blocks=num_blocks,
                               features=f, hidden=hidden, batch_block=bb,
                               eps=EPS)
    z, lad = pl.pallas_call(
        kernel,
        out_shape=(jax.ShapeDtypeStruct((b_pad, f), jnp.float32),
                   jax.ShapeDtypeStruct((b_pad, 1), jnp.float32)),
        grid=(pl.cdiv(b_pad, bb),),
        in_specs=[pl.BlockSpec((bb, f), lambda i: (i, 0)),
                  pl.BlockSpec(wslab.shape, lambda i: (0, 0)),
                  pl.BlockSpec(bslab.shape, lambda i: (0, 0))],
        out_specs=(pl.BlockSpec((bb, f), lambda i: (i, 0)),
                   pl.BlockSpec((bb, 1), lambda i: (i, 0))),
        compiler_params=pltpu.CompilerParams(
            dimension_semantics=("parallel",)),     # shards across v7x's 2 TCs
    )(x_p, wslab, bslab)
    # nflows' InverseTransform.forward returns (outputs, logabsdet)
    return z[:b], lad[:b, 0]


# --------------------------- pure-JAX reference ------------------------------
def student_forward_ref(x, params):
    f = x.shape[1]
    num_blocks = len(params["blocks"]) // 2

    def made(z):
        h = z @ params["w0"] + params["b0"]
        for i in range(num_blocks):
            w_a, b_a = params["blocks"][2 * i]
            w_b, b_b = params["blocks"][2 * i + 1]
            t = jnp.maximum(h, 0.0) @ w_a + b_a
            t = jnp.maximum(t, 0.0) @ w_b + b_b
            h = h + t
        ss = h @ params["wss"] + params["bss"]
        return ss[:, :f], ss[:, f:]                  # (shift, uscale)

    z = jnp.zeros_like(x)
    scale = jnp.ones_like(x)
    for _ in range(f):
        sh, us = made(z)
        scale = _softplus(us) + EPS
        z = (x - sh) / scale
    lad = -jnp.sum(jnp.log(scale), axis=-1)
    return z, lad


# ----------------------------------- main ------------------------------------
if __name__ == "__main__":
    key = jax.random.PRNGKey(0)
    kx, kp = jax.random.split(key)
    x = jax.random.normal(kx, (BATCH, FEATURES), jnp.float32)
    params = init_params(kp, FEATURES, HIDDEN, NUM_BLOCKS)

    # One-time packing + iteration-0 fold (amortized across calls).
    wslab, bslab = pack_params(params)

    z, lad = jax.block_until_ready(student_forward(x, wslab, bslab))

    z_ref, lad_ref = student_forward_ref(x, params)
    np.testing.assert_allclose(np.asarray(z), np.asarray(z_ref),
                               rtol=1e-5, atol=1e-5)
    np.testing.assert_allclose(np.asarray(lad), np.asarray(lad_ref),
                               rtol=1e-5, atol=1e-5)
    print("KERNEL_OK")
</pallas_src>

<mosaic_0001>
module attributes {stable_mosaic.version = 11 : i64} {
  func.func @maf_inverse_kernel(%arg0: i32, %arg1: memref<8x8xf32, #tpu.memory_space<vmem>>, %arg2: memref<168x32xf32, #tpu.memory_space<vmem>>, %arg3: memref<8x32xf32, #tpu.memory_space<vmem>>, %arg4: memref<8x8xf32, #tpu.memory_space<vmem>>, %arg5: memref<8x1xf32, #tpu.memory_space<vmem>>) attributes {dimension_semantics = [#tpu.dimension_semantics<parallel>], iteration_bounds = array<i64: 1>, scalar_prefetch = 0 : i64, scratch_operands = 0 : i64, tpu.core_type = #tpu.core_type<tc>, window_params = [{transform_indices = @transform_0, window_bounds = array<i64: 8, 8>}, {pipeline_mode = #tpu.pipeline_mode<synchronous>, transform_indices = @transform_1, window_bounds = array<i64: 168, 32>}, {pipeline_mode = #tpu.pipeline_mode<synchronous>, transform_indices = @transform_2, window_bounds = array<i64: 8, 32>}, {transform_indices = @transform_3, window_bounds = array<i64: 8, 8>}, {transform_indices = @transform_4, window_bounds = array<i64: 8, 1>}]} {
    %c0 = arith.constant 0 : index
    %c0_0 = arith.constant 0 : index
    %0 = vector.load %arg1[%c0, %c0_0] : memref<8x8xf32, #tpu.memory_space<vmem>>, vector<8x8xf32>
    %c0_1 = arith.constant 0 : index
    %c0_2 = arith.constant 0 : index
    %1 = vector.load %arg2[%c0_1, %c0_2] : memref<168x32xf32, #tpu.memory_space<vmem>>, vector<8x32xf32>
    %c8 = arith.constant 8 : index
    %c0_3 = arith.constant 0 : index
    %2 = vector.load %arg2[%c8, %c0_3] : memref<168x32xf32, #tpu.memory_space<vmem>>, vector<32x32xf32>
    %c40 = arith.constant 40 : index
    %c0_4 = arith.constant 0 : index
    %3 = vector.load %arg2[%c40, %c0_4] : memref<168x32xf32, #tpu.memory_space<vmem>>, vector<32x32xf32>
    %c72 = arith.constant 72 : index
    %c0_5 = arith.constant 0 : index
    %4 = vector.load %arg2[%c72, %c0_5] : memref<168x32xf32, #tpu.memory_space<vmem>>, vector<32x32xf32>
    %c104 = arith.constant 104 : index
    %c0_6 = arith.constant 0 : index
    %5 = vector.load %arg2[%c104, %c0_6] : memref<168x32xf32, #tpu.memory_space<vmem>>, vector<32x32xf32>
    %c136 = arith.constant 136 : index
    %c0_7 = arith.constant 0 : index
    %6 = vector.load %arg2[%c136, %c0_7] : memref<168x32xf32, #tpu.memory_space<vmem>>, vector<32x32xf32>
    %c0_8 = arith.constant 0 : index
    %c0_9 = arith.constant 0 : index
    %7 = vector.load %arg3[%c0_8, %c0_9] : memref<8x32xf32, #tpu.memory_space<vmem>>, vector<1x32xf32>
    %8 = vector.shape_cast %7 : vector<1x32xf32> to vector<1x32xf32>
    %9 = vector.broadcast %8 : vector<1x32xf32> to vector<8x32xf32>
    %c1 = arith.constant 1 : index
    %c0_10 = arith.constant 0 : index
    %10 = vector.load %arg3[%c1, %c0_10] : memref<8x32xf32, #tpu.memory_space<vmem>>, vector<1x32xf32>
    %11 = vector.shape_cast %10 : vector<1x32xf32> to vector<1x32xf32>
    %12 = vector.broadcast %11 : vector<1x32xf32> to vector<8x32xf32>
    %c2 = arith.constant 2 : index
    %c0_11 = arith.constant 0 : index
    %13 = vector.load %arg3[%c2, %c0_11] : memref<8x32xf32, #tpu.memory_space<vmem>>, vector<1x32xf32>
    %14 = vector.shape_cast %13 : vector<1x32xf32> to vector<1x32xf32>
    %15 = vector.broadcast %14 : vector<1x32xf32> to vector<8x32xf32>
    %c3 = arith.constant 3 : index
    %c0_12 = arith.constant 0 : index
    %16 = vector.load %arg3[%c3, %c0_12] : memref<8x32xf32, #tpu.memory_space<vmem>>, vector<1x32xf32>
    %17 = vector.shape_cast %16 : vector<1x32xf32> to vector<1x32xf32>
    %18 = vector.broadcast %17 : vector<1x32xf32> to vector<8x32xf32>
    %c4 = arith.constant 4 : index
    %c0_13 = arith.constant 0 : index
    %19 = vector.load %arg3[%c4, %c0_13] : memref<8x32xf32, #tpu.memory_space<vmem>>, vector<1x32xf32>
    %20 = vector.shape_cast %19 : vector<1x32xf32> to vector<1x32xf32>
    %21 = vector.broadcast %20 : vector<1x32xf32> to vector<8x32xf32>
    %c5 = arith.constant 5 : index
    %c0_14 = arith.constant 0 : index
    %22 = vector.load %arg3[%c5, %c0_14] : memref<8x32xf32, #tpu.memory_space<vmem>>, vector<1x32xf32>
    %23 = vector.shape_cast %22 : vector<1x32xf32> to vector<1x32xf32>
    %24 = vector.broadcast %23 : vector<1x32xf32> to vector<8x32xf32>
    %c6 = arith.constant 6 : index
    %c0_15 = arith.constant 0 : index
    %25 = vector.load %arg3[%c6, %c0_15] : memref<8x32xf32, #tpu.memory_space<vmem>>, vector<1x8xf32>
    %26 = vector.shape_cast %25 : vector<1x8xf32> to vector<1x8xf32>
    %27 = vector.broadcast %26 : vector<1x8xf32> to vector<8x8xf32>
    %c7 = arith.constant 7 : index
    %c0_16 = arith.constant 0 : index
    %28 = vector.load %arg3[%c7, %c0_16] : memref<8x32xf32, #tpu.memory_space<vmem>>, vector<1x8xf32>
    %29 = vector.shape_cast %28 : vector<1x8xf32> to vector<1x8xf32>
    %30 = vector.broadcast %29 : vector<1x8xf32> to vector<8x8xf32>
    %31 = arith.subf %0, %27 : vector<8x8xf32>
    %32 = arith.mulf %31, %30 : vector<8x8xf32>
    %cst = arith.constant dense<0.000000e+00> : vector<8x32xf32>
    %33 = tpu.matmul %32, %1, %cst {dimension_numbers = #tpu.dot_dimension_numbers<[1], [0], [0], [1], [0, 0, 1, 1], [], []>} : vector<8x8xf32>, vector<8x32xf32>, vector<8x32xf32> -> vector<8x32xf32>
    %34 = arith.addf %33, %9 : vector<8x32xf32>
    %cst_17 = arith.constant 0.000000e+00 : f32
    %35 = vector.broadcast %cst_17 : f32 to vector<8x32xf32>
    %36 = arith.maximumf %34, %35 : vector<8x32xf32>
    %cst_18 = arith.constant dense<0.000000e+00> : vector<8x32xf32>
    %37 = tpu.matmul %36, %2, %cst_18 {dimension_numbers = #tpu.dot_dimension_numbers<[1], [0], [0], [1], [0, 0, 1, 1], [], []>} : vector<8x32xf32>, vector<32x32xf32>, vector<8x32xf32> -> vector<8x32xf32>
    %38 = arith.addf %37, %12 : vector<8x32xf32>
    %cst_19 = arith.constant 0.000000e+00 : f32
    %39 = vector.broadcast %cst_19 : f32 to vector<8x32xf32>
    %40 = arith.maximumf %38, %39 : vector<8x32xf32>
    %cst_20 = arith.constant dense<0.000000e+00> : vector<8x32xf32>
    %41 = tpu.matmul %40, %3, %cst_20 {dimension_numbers = #tpu.dot_dimension_numbers<[1], [0], [0], [1], [0, 0, 1, 1], [], []>} : vector<8x32xf32>, vector<32x32xf32>, vector<8x32xf32> -> vector<8x32xf32>
    %42 = arith.addf %41, %15 : vector<8x32xf32>
    %43 = arith.addf %34, %42 : vector<8x32xf32>
    %cst_21 = arith.constant 0.000000e+00 : f32
    %44 = vector.broadcast %cst_21 : f32 to vector<8x32xf32>
    %45 = arith.maximumf %43, %44 : vector<8x32xf32>
    %cst_22 = arith.constant dense<0.000000e+00> : vector<8x32xf32>
    %46 = tpu.matmul %45, %4, %cst_22 {dimension_numbers = #tpu.dot_dimension_numbers<[1], [0], [0], [1], [0, 0, 1, 1], [], []>} : vector<8x32xf32>, vector<32x32xf32>, vector<8x32xf32> -> vector<8x32xf32>
    %47 = arith.addf %46, %18 : vector<8x32xf32>
    %cst_23 = arith.constant 0.000000e+00 : f32
    %48 = vector.broadcast %cst_23 : f32 to vector<8x32xf32>
    %49 = arith.maximumf %47, %48 : vector<8x32xf32>
    %cst_24 = arith.constant dense<0.000000e+00> : vector<8x32xf32>
    %50 = tpu.matmul %49, %5, %cst_24 {dimension_numbers = #tpu.dot_dimension_numbers<[1], [0], [0], [1], [0, 0, 1, 1], [], []>} : vector<8x32xf32>, vector<32x32xf32>, vector<8x32xf32> -> vector<8x32xf32>
    %51 = arith.addf %50, %21 : vector<8x32xf32>
    %52 = arith.addf %43, %51 : vector<8x32xf32>
    %cst_25 = arith.constant dense<0.000000e+00> : vector<8x32xf32>
    %53 = tpu.matmul %52, %6, %cst_25 {dimension_numbers = #tpu.dot_dimension_numbers<[1], [0], [0], [1], [0, 0, 1, 1], [], []>} : vector<8x32xf32>, vector<32x32xf32>, vector<8x32xf32> -> vector<8x32xf32>
    %54 = arith.addf %53, %24 : vector<8x32xf32>
    %55 = vector.extract_strided_slice %54 {offsets = [0, 0], sizes = [8, 8], strides = [1, 1]} : vector<8x32xf32> to vector<8x8xf32>
    %56 = vector.extract_strided_slice %54 {offsets = [0, 8], sizes = [8, 8], strides = [1, 1]} : vector<8x32xf32> to vector<8x8xf32>
    %57 = math.absf %56 : vector<8x8xf32>
    %cst_26 = arith.constant 0.000000e+00 : f32
    %58 = vector.broadcast %cst_26 : f32 to vector<8x8xf32>
    %59 = arith.subf %58, %57 : vector<8x8xf32>
    %60 = math.exp %59 : vector<8x8xf32>
    %61 = math.log1p %60 : vector<8x8xf32>
    %cst_27 = arith.constant 0.000000e+00 : f32
    %62 = vector.broadcast %cst_27 : f32 to vector<8x8xf32>
    %63 = arith.maximumf %56, %62 : vector<8x8xf32>
    %64 = arith.addf %61, %63 : vector<8x8xf32>
    %cst_28 = arith.constant 1.000000e-03 : f32
    %65 = vector.broadcast %cst_28 : f32 to vector<8x8xf32>
    %66 = arith.addf %64, %65 : vector<8x8xf32>
    %67 = tpu.reciprocal %66 {approx = true} : vector<8x8xf32> -> vector<8x8xf32>
    %68 = arith.mulf %66, %67 : vector<8x8xf32>
    %cst_29 = arith.constant 2.000000e+00 : f32
    %69 = vector.broadcast %cst_29 : f32 to vector<8x8xf32>
    %70 = arith.subf %69, %68 : vector<8x8xf32>
    %71 = arith.mulf %67, %70 : vector<8x8xf32>
    %72 = arith.subf %0, %55 : vector<8x8xf32>
    %73 = arith.mulf %72, %71 : vector<8x8xf32>
    %cst_30 = arith.constant dense<0.000000e+00> : vector<8x32xf32>
    %74 = tpu.matmul %73, %1, %cst_30 {dimension_numbers = #tpu.dot_dimension_numbers<[1], [0], [0], [1], [0, 0, 1, 1], [], []>} : vector<8x8xf32>, vector<8x32xf32>, vector<8x32xf32> -> vector<8x32xf32>
    %75 = arith.addf %74, %9 : vector<8x32xf32>
    %cst_31 = arith.constant 0.000000e+00 : f32
    %76 = vector.broadcast %cst_31 : f32 to vector<8x32xf32>
    %77 = arith.maximumf %75, %76 : vector<8x32xf32>
    %cst_32 = arith.constant dense<0.000000e+00> : vector<8x32xf32>
    %78 = tpu.matmul %77, %2, %cst_32 {dimension_numbers = #tpu.dot_dimension_numbers<[1], [0], [0], [1], [0, 0, 1, 1], [], []>} : vector<8x32xf32>, vector<32x32xf32>, vector<8x32xf32> -> vector<8x32xf32>
    %79 = arith.addf %78, %12 : vector<8x32xf32>
    %cst_33 = arith.constant 0.000000e+00 : f32
    %80 = vector.broadcast %cst_33 : f32 to vector<8x32xf32>
    %81 = arith.maximumf %79, %80 : vector<8x32xf32>
    %cst_34 = arith.constant dense<0.000000e+00> : vector<8x32xf32>
    %82 = tpu.matmul %81, %3, %cst_34 {dimension_numbers = #tpu.dot_dimension_numbers<[1], [0], [0], [1], [0, 0, 1, 1], [], []>} : vector<8x32xf32>, vector<32x32xf32>, vector<8x32xf32> -> vector<8x32xf32>
    %83 = arith.addf %82, %15 : vector<8x32xf32>
    %84 = arith.addf %75, %83 : vector<8x32xf32>
    %cst_35 = arith.constant 0.000000e+00 : f32
    %85 = vector.broadcast %cst_35 : f32 to vector<8x32xf32>
    %86 = arith.maximumf %84, %85 : vector<8x32xf32>
    %cst_36 = arith.constant dense<0.000000e+00> : vector<8x32xf32>
    %87 = tpu.matmul %86, %4, %cst_36 {dimension_numbers = #tpu.dot_dimension_numbers<[1], [0], [0], [1], [0, 0, 1, 1], [], []>} : vector<8x32xf32>, vector<32x32xf32>, vector<8x32xf32> -> vector<8x32xf32>
    %88 = arith.addf %87, %18 : vector<8x32xf32>
    %cst_37 = arith.constant 0.000000e+00 : f32
    %89 = vector.broadcast %cst_37 : f32 to vector<8x32xf32>
    %90 = arith.maximumf %88, %89 : vector<8x32xf32>
    %cst_38 = arith.constant dense<0.000000e+00> : vector<8x32xf32>
    %91 = tpu.matmul %90, %5, %cst_38 {dimension_numbers = #tpu.dot_dimension_numbers<[1], [0], [0], [1], [0, 0, 1, 1], [], []>} : vector<8x32xf32>, vector<32x32xf32>, vector<8x32xf32> -> vector<8x32xf32>
    %92 = arith.addf %91, %21 : vector<8x32xf32>
    %93 = arith.addf %84, %92 : vector<8x32xf32>
    %cst_39 = arith.constant dense<0.000000e+00> : vector<8x32xf32>
    %94 = tpu.matmul %93, %6, %cst_39 {dimension_numbers = #tpu.dot_dimension_numbers<[1], [0], [0], [1], [0, 0, 1, 1], [], []>} : vector<8x32xf32>, vector<32x32xf32>, vector<8x32xf32> -> vector<8x32xf32>
    %95 = arith.addf %94, %24 : vector<8x32xf32>
    %96 = vector.extract_strided_slice %95 {offsets = [0, 0], sizes = [8, 8], strides = [1, 1]} : vector<8x32xf32> to vector<8x8xf32>
    %97 = vector.extract_strided_slice %95 {offsets = [0, 8], sizes = [8, 8], strides = [1, 1]} : vector<8x32xf32> to vector<8x8xf32>
    %98 = math.absf %97 : vector<8x8xf32>
    %cst_40 = arith.constant 0.000000e+00 : f32
    %99 = vector.broadcast %cst_40 : f32 to vector<8x8xf32>
    %100 = arith.subf %99, %98 : vector<8x8xf32>
    %101 = math.exp %100 : vector<8x8xf32>
    %102 = math.log1p %101 : vector<8x8xf32>
    %cst_41 = arith.constant 0.000000e+00 : f32
    %103 = vector.broadcast %cst_41 : f32 to vector<8x8xf32>
    %104 = arith.maximumf %97, %103 : vector<8x8xf32>
    %105 = arith.addf %102, %104 : vector<8x8xf32>
    %cst_42 = arith.constant 1.000000e-03 : f32
    %106 = vector.broadcast %cst_42 : f32 to vector<8x8xf32>
    %107 = arith.addf %105, %106 : vector<8x8xf32>
    %108 = tpu.reciprocal %107 {approx = true} : vector<8x8xf32> -> vector<8x8xf32>
    %109 = arith.mulf %107, %108 : vector<8x8xf32>
    %cst_43 = arith.constant 2.000000e+00 : f32
    %110 = vector.broadcast %cst_43 : f32 to vector<8x8xf32>
    %111 = arith.subf %110, %109 : vector<8x8xf32>
    %112 = arith.mulf %108, %111 : vector<8x8xf32>
    %113 = arith.subf %0, %96 : vector<8x8xf32>
    %114 = arith.mulf %113, %112 : vector<8x8xf32>
    %cst_44 = arith.constant dense<0.000000e+00> : vector<8x32xf32>
    %115 = tpu.matmul %114, %1, %cst_44 {dimension_numbers = #tpu.dot_dimension_numbers<[1], [0], [0], [1], [0, 0, 1, 1], [], []>} : vector<8x8xf32>, vector<8x32xf32>, vector<8x32xf32> -> vector<8x32xf32>
    %116 = arith.addf %115, %9 : vector<8x32xf32>
    %cst_45 = arith.constant 0.000000e+00 : f32
    %117 = vector.broadcast %cst_45 : f32 to vector<8x32xf32>
    %118 = arith.maximumf %116, %117 : vector<8x32xf32>
    %cst_46 = arith.constant dense<0.000000e+00> : vector<8x32xf32>
    %119 = tpu.matmul %118, %2, %cst_46 {dimension_numbers = #tpu.dot_dimension_numbers<[1], [0], [0], [1], [0, 0, 1, 1], [], []>} : vector<8x32xf32>, vector<32x32xf32>, vector<8x32xf32> -> vector<8x32xf32>
    %120 = arith.addf %119, %12 : vector<8x32xf32>
    %cst_47 = arith.constant 0.000000e+00 : f32
    %121 = vector.broadcast %cst_47 : f32 to vector<8x32xf32>
    %122 = arith.maximumf %120, %121 : vector<8x32xf32>
    %cst_48 = arith.constant dense<0.000000e+00> : vector<8x32xf32>
    %123 = tpu.matmul %122, %3, %cst_48 {dimension_numbers = #tpu.dot_dimension_numbers<[1], [0], [0], [1], [0, 0, 1, 1], [], []>} : vector<8x32xf32>, vector<32x32xf32>, vector<8x32xf32> -> vector<8x32xf32>
    %124 = arith.addf %123, %15 : vector<8x32xf32>
    %125 = arith.addf %116, %124 : vector<8x32xf32>
    %cst_49 = arith.constant 0.000000e+00 : f32
    %126 = vector.broadcast %cst_49 : f32 to vector<8x32xf32>
    %127 = arith.maximumf %125, %126 : vector<8x32xf32>
    %cst_50 = arith.constant dense<0.000000e+00> : vector<8x32xf32>
    %128 = tpu.matmul %127, %4, %cst_50 {dimension_numbers = #tpu.dot_dimension_numbers<[1], [0], [0], [1], [0, 0, 1, 1], [], []>} : vector<8x32xf32>, vector<32x32xf32>, vector<8x32xf32> -> vector<8x32xf32>
    %129 = arith.addf %128, %18 : vector<8x32xf32>
    %cst_51 = arith.constant 0.000000e+00 : f32
    %130 = vector.broadcast %cst_51 : f32 to vector<8x32xf32>
    %131 = arith.maximumf %129, %130 : vector<8x32xf32>
    %cst_52 = arith.constant dense<0.000000e+00> : vector<8x32xf32>
    %132 = tpu.matmul %131, %5, %cst_52 {dimension_numbers = #tpu.dot_dimension_numbers<[1], [0], [0], [1], [0, 0, 1, 1], [], []>} : vector<8x32xf32>, vector<32x32xf32>, vector<8x32xf32> -> vector<8x32xf32>
    %133 = arith.addf %132, %21 : vector<8x32xf32>
    %134 = arith.addf %125, %133 : vector<8x32xf32>
    %cst_53 = arith.constant dense<0.000000e+00> : vector<8x32xf32>
    %135 = tpu.matmul %134, %6, %cst_53 {dimension_numbers = #tpu.dot_dimension_numbers<[1], [0], [0], [1], [0, 0, 1, 1], [], []>} : vector<8x32xf32>, vector<32x32xf32>, vector<8x32xf32> -> vector<8x32xf32>
    %136 = arith.addf %135, %24 : vector<8x32xf32>
    %137 = vector.extract_strided_slice %136 {offsets = [0, 0], sizes = [8, 8], strides = [1, 1]} : vector<8x32xf32> to vector<8x8xf32>
    %138 = vector.extract_strided_slice %136 {offsets = [0, 8], sizes = [8, 8], strides = [1, 1]} : vector<8x32xf32> to vector<8x8xf32>
    %139 = math.absf %138 : vector<8x8xf32>
    %cst_54 = arith.constant 0.000000e+00 : f32
    %140 = vector.broadcast %cst_54 : f32 to vector<8x8xf32>
    %141 = arith.subf %140, %139 : vector<8x8xf32>
    %142 = math.exp %141 : vector<8x8xf32>
    %143 = math.log1p %142 : vector<8x8xf32>
    %cst_55 = arith.constant 0.000000e+00 : f32
    %144 = vector.broadcast %cst_55 : f32 to vector<8x8xf32>
    %145 = arith.maximumf %138, %144 : vector<8x8xf32>
    %146 = arith.addf %143, %145 : vector<8x8xf32>
    %cst_56 = arith.constant 1.000000e-03 : f32
    %147 = vector.broadcast %cst_56 : f32 to vector<8x8xf32>
    %148 = arith.addf %146, %147 : vector<8x8xf32>
    %149 = tpu.reciprocal %148 {approx = true} : vector<8x8xf32> -> vector<8x8xf32>
    %150 = arith.mulf %148, %149 : vector<8x8xf32>
    %cst_57 = arith.constant 2.000000e+00 : f32
    %151 = vector.broadcast %cst_57 : f32 to vector<8x8xf32>
    %152 = arith.subf %151, %150 : vector<8x8xf32>
    %153 = arith.mulf %149, %152 : vector<8x8xf32>
    %154 = arith.subf %0, %137 : vector<8x8xf32>
    %155 = arith.mulf %154, %153 : vector<8x8xf32>
    %cst_58 = arith.constant dense<0.000000e+00> : vector<8x32xf32>
    %156 = tpu.matmul %155, %1, %cst_58 {dimension_numbers = #tpu.dot_dimension_numbers<[1], [0], [0], [1], [0, 0, 1, 1], [], []>} : vector<8x8xf32>, vector<8x32xf32>, vector<8x32xf32> -> vector<8x32xf32>
    %157 = arith.addf %156, %9 : vector<8x32xf32>
    %cst_59 = arith.constant 0.000000e+00 : f32
    %158 = vector.broadcast %cst_59 : f32 to vector<8x32xf32>
    %159 = arith.maximumf %157, %158 : vector<8x32xf32>
    %cst_60 = arith.constant dense<0.000000e+00> : vector<8x32xf32>
    %160 = tpu.matmul %159, %2, %cst_60 {dimension_numbers = #tpu.dot_dimension_numbers<[1], [0], [0], [1], [0, 0, 1, 1], [], []>} : vector<8x32xf32>, vector<32x32xf32>, vector<8x32xf32> -> vector<8x32xf32>
    %161 = arith.addf %160, %12 : vector<8x32xf32>
    %cst_61 = arith.constant 0.000000e+00 : f32
    %162 = vector.broadcast %cst_61 : f32 to vector<8x32xf32>
    %163 = arith.maximumf %161, %162 : vector<8x32xf32>
    %cst_62 = arith.constant dense<0.000000e+00> : vector<8x32xf32>
    %164 = tpu.matmul %163, %3, %cst_62 {dimension_numbers = #tpu.dot_dimension_numbers<[1], [0], [0], [1], [0, 0, 1, 1], [], []>} : vector<8x32xf32>, vector<32x32xf32>, vector<8x32xf32> -> vector<8x32xf32>
    %165 = arith.addf %164, %15 : vector<8x32xf32>
    %166 = arith.addf %157, %165 : vector<8x32xf32>
    %cst_63 = arith.constant 0.000000e+00 : f32
    %167 = vector.broadcast %cst_63 : f32 to vector<8x32xf32>
    %168 = arith.maximumf %166, %167 : vector<8x32xf32>
    %cst_64 = arith.constant dense<0.000000e+00> : vector<8x32xf32>
    %169 = tpu.matmul %168, %4, %cst_64 {dimension_numbers = #tpu.dot_dimension_numbers<[1], [0], [0], [1], [0, 0, 1, 1], [], []>} : vector<8x32xf32>, vector<32x32xf32>, vector<8x32xf32> -> vector<8x32xf32>
    %170 = arith.addf %169, %18 : vector<8x32xf32>
    %cst_65 = arith.constant 0.000000e+00 : f32
    %171 = vector.broadcast %cst_65 : f32 to vector<8x32xf32>
    %172 = arith.maximumf %170, %171 : vector<8x32xf32>
    %cst_66 = arith.constant dense<0.000000e+00> : vector<8x32xf32>
    %173 = tpu.matmul %172, %5, %cst_66 {dimension_numbers = #tpu.dot_dimension_numbers<[1], [0], [0], [1], [0, 0, 1, 1], [], []>} : vector<8x32xf32>, vector<32x32xf32>, vector<8x32xf32> -> vector<8x32xf32>
    %174 = arith.addf %173, %21 : vector<8x32xf32>
    %175 = arith.addf %166, %174 : vector<8x32xf32>
    %cst_67 = arith.constant dense<0.000000e+00> : vector<8x32xf32>
    %176 = tpu.matmul %175, %6, %cst_67 {dimension_numbers = #tpu.dot_dimension_numbers<[1], [0], [0], [1], [0, 0, 1, 1], [], []>} : vector<8x32xf32>, vector<32x32xf32>, vector<8x32xf32> -> vector<8x32xf32>
    %177 = arith.addf %176, %24 : vector<8x32xf32>
    %178 = vector.extract_strided_slice %177 {offsets = [0, 0], sizes = [8, 8], strides = [1, 1]} : vector<8x32xf32> to vector<8x8xf32>
    %179 = vector.extract_strided_slice %177 {offsets = [0, 8], sizes = [8, 8], strides = [1, 1]} : vector<8x32xf32> to vector<8x8xf32>
    %180 = math.absf %179 : vector<8x8xf32>
    %cst_68 = arith.constant 0.000000e+00 : f32
    %181 = vector.broadcast %cst_68 : f32 to vector<8x8xf32>
    %182 = arith.subf %181, %180 : vector<8x8xf32>
    %183 = math.exp %182 : vector<8x8xf32>
    %184 = math.log1p %183 : vector<8x8xf32>
    %cst_69 = arith.constant 0.000000e+00 : f32
    %185 = vector.broadcast %cst_69 : f32 to vector<8x8xf32>
    %186 = arith.maximumf %179, %185 : vector<8x8xf32>
    %187 = arith.addf %184, %186 : vector<8x8xf32>
    %cst_70 = arith.constant 1.000000e-03 : f32
    %188 = vector.broadcast %cst_70 : f32 to vector<8x8xf32>
    %189 = arith.addf %187, %188 : vector<8x8xf32>
    %190 = tpu.reciprocal %189 {approx = true} : vector<8x8xf32> -> vector<8x8xf32>
    %191 = arith.mulf %189, %190 : vector<8x8xf32>
    %cst_71 = arith.constant 2.000000e+00 : f32
    %192 = vector.broadcast %cst_71 : f32 to vector<8x8xf32>
    %193 = arith.subf %192, %191 : vector<8x8xf32>
    %194 = arith.mulf %190, %193 : vector<8x8xf32>
    %195 = arith.subf %0, %178 : vector<8x8xf32>
    %196 = arith.mulf %195, %194 : vector<8x8xf32>
    %cst_72 = arith.constant dense<0.000000e+00> : vector<8x32xf32>
    %197 = tpu.matmul %196, %1, %cst_72 {dimension_numbers = #tpu.dot_dimension_numbers<[1], [0], [0], [1], [0, 0, 1, 1], [], []>} : vector<8x8xf32>, vector<8x32xf32>, vector<8x32xf32> -> vector<8x32xf32>
    %198 = arith.addf %197, %9 : vector<8x32xf32>
    %cst_73 = arith.constant 0.000000e+00 : f32
    %199 = vector.broadcast %cst_73 : f32 to vector<8x32xf32>
    %200 = arith.maximumf %198, %199 : vector<8x32xf32>
    %cst_74 = arith.constant dense<0.000000e+00> : vector<8x32xf32>
    %201 = tpu.matmul %200, %2, %cst_74 {dimension_numbers = #tpu.dot_dimension_numbers<[1], [0], [0], [1], [0, 0, 1, 1], [], []>} : vector<8x32xf32>, vector<32x32xf32>, vector<8x32xf32> -> vector<8x32xf32>
    %202 = arith.addf %201, %12 : vector<8x32xf32>
    %cst_75 = arith.constant 0.000000e+00 : f32
    %203 = vector.broadcast %cst_75 : f32 to vector<8x32xf32>
    %204 = arith.maximumf %202, %203 : vector<8x32xf32>
    %cst_76 = arith.constant dense<0.000000e+00> : vector<8x32xf32>
    %205 = tpu.matmul %204, %3, %cst_76 {dimension_numbers = #tpu.dot_dimension_numbers<[1], [0], [0], [1], [0, 0, 1, 1], [], []>} : vector<8x32xf32>, vector<32x32xf32>, vector<8x32xf32> -> vector<8x32xf32>
    %206 = arith.addf %205, %15 : vector<8x32xf32>
    %207 = arith.addf %198, %206 : vector<8x32xf32>
    %cst_77 = arith.constant 0.000000e+00 : f32
    %208 = vector.broadcast %cst_77 : f32 to vector<8x32xf32>
    %209 = arith.maximumf %207, %208 : vector<8x32xf32>
    %cst_78 = arith.constant dense<0.000000e+00> : vector<8x32xf32>
    %210 = tpu.matmul %209, %4, %cst_78 {dimension_numbers = #tpu.dot_dimension_numbers<[1], [0], [0], [1], [0, 0, 1, 1], [], []>} : vector<8x32xf32>, vector<32x32xf32>, vector<8x32xf32> -> vector<8x32xf32>
    %211 = arith.addf %210, %18 : vector<8x32xf32>
    %cst_79 = arith.constant 0.000000e+00 : f32
    %212 = vector.broadcast %cst_79 : f32 to vector<8x32xf32>
    %213 = arith.maximumf %211, %212 : vector<8x32xf32>
    %cst_80 = arith.constant dense<0.000000e+00> : vector<8x32xf32>
    %214 = tpu.matmul %213, %5, %cst_80 {dimension_numbers = #tpu.dot_dimension_numbers<[1], [0], [0], [1], [0, 0, 1, 1], [], []>} : vector<8x32xf32>, vector<32x32xf32>, vector<8x32xf32> -> vector<8x32xf32>
    %215 = arith.addf %214, %21 : vector<8x32xf32>
    %216 = arith.addf %207, %215 : vector<8x32xf32>
    %cst_81 = arith.constant dense<0.000000e+00> : vector<8x32xf32>
    %217 = tpu.matmul %216, %6, %cst_81 {dimension_numbers = #tpu.dot_dimension_numbers<[1], [0], [0], [1], [0, 0, 1, 1], [], []>} : vector<8x32xf32>, vector<32x32xf32>, vector<8x32xf32> -> vector<8x32xf32>
    %218 = arith.addf %217, %24 : vector<8x32xf32>
    %219 = vector.extract_strided_slice %218 {offsets = [0, 0], sizes = [8, 8], strides = [1, 1]} : vector<8x32xf32> to vector<8x8xf32>
    %220 = vector.extract_strided_slice %218 {offsets = [0, 8], sizes = [8, 8], strides = [1, 1]} : vector<8x32xf32> to vector<8x8xf32>
    %221 = math.absf %220 : vector<8x8xf32>
    %cst_82 = arith.constant 0.000000e+00 : f32
    %222 = vector.broadcast %cst_82 : f32 to vector<8x8xf32>
    %223 = arith.subf %222, %221 : vector<8x8xf32>
    %224 = math.exp %223 : vector<8x8xf32>
    %225 = math.log1p %224 : vector<8x8xf32>
    %cst_83 = arith.constant 0.000000e+00 : f32
    %226 = vector.broadcast %cst_83 : f32 to vector<8x8xf32>
    %227 = arith.maximumf %220, %226 : vector<8x8xf32>
    %228 = arith.addf %225, %227 : vector<8x8xf32>
    %cst_84 = arith.constant 1.000000e-03 : f32
    %229 = vector.broadcast %cst_84 : f32 to vector<8x8xf32>
    %230 = arith.addf %228, %229 : vector<8x8xf32>
    %231 = tpu.reciprocal %230 {approx = true} : vector<8x8xf32> -> vector<8x8xf32>
    %232 = arith.mulf %230, %231 : vector<8x8xf32>
    %cst_85 = arith.constant 2.000000e+00 : f32
    %233 = vector.broadcast %cst_85 : f32 to vector<8x8xf32>
    %234 = arith.subf %233, %232 : vector<8x8xf32>
    %235 = arith.mulf %231, %234 : vector<8x8xf32>
    %236 = arith.subf %0, %219 : vector<8x8xf32>
    %237 = arith.mulf %236, %235 : vector<8x8xf32>
    %cst_86 = arith.constant dense<0.000000e+00> : vector<8x32xf32>
    %238 = tpu.matmul %237, %1, %cst_86 {dimension_numbers = #tpu.dot_dimension_numbers<[1], [0], [0], [1], [0, 0, 1, 1], [], []>} : vector<8x8xf32>, vector<8x32xf32>, vector<8x32xf32> -> vector<8x32xf32>
    %239 = arith.addf %238, %9 : vector<8x32xf32>
    %cst_87 = arith.constant 0.000000e+00 : f32
    %240 = vector.broadcast %cst_87 : f32 to vector<8x32xf32>
    %241 = arith.maximumf %239, %240 : vector<8x32xf32>
    %cst_88 = arith.constant dense<0.000000e+00> : vector<8x32xf32>
    %242 = tpu.matmul %241, %2, %cst_88 {dimension_numbers = #tpu.dot_dimension_numbers<[1], [0], [0], [1], [0, 0, 1, 1], [], []>} : vector<8x32xf32>, vector<32x32xf32>, vector<8x32xf32> -> vector<8x32xf32>
    %243 = arith.addf %242, %12 : vector<8x32xf32>
    %cst_89 = arith.constant 0.000000e+00 : f32
    %244 = vector.broadcast %cst_89 : f32 to vector<8x32xf32>
    %245 = arith.maximumf %243, %244 : vector<8x32xf32>
    %cst_90 = arith.constant dense<0.000000e+00> : vector<8x32xf32>
    %246 = tpu.matmul %245, %3, %cst_90 {dimension_numbers = #tpu.dot_dimension_numbers<[1], [0], [0], [1], [0, 0, 1, 1], [], []>} : vector<8x32xf32>, vector<32x32xf32>, vector<8x32xf32> -> vector<8x32xf32>
    %247 = arith.addf %246, %15 : vector<8x32xf32>
    %248 = arith.addf %239, %247 : vector<8x32xf32>
    %cst_91 = arith.constant 0.000000e+00 : f32
    %249 = vector.broadcast %cst_91 : f32 to vector<8x32xf32>
    %250 = arith.maximumf %248, %249 : vector<8x32xf32>
    %cst_92 = arith.constant dense<0.000000e+00> : vector<8x32xf32>
    %251 = tpu.matmul %250, %4, %cst_92 {dimension_numbers = #tpu.dot_dimension_numbers<[1], [0], [0], [1], [0, 0, 1, 1], [], []>} : vector<8x32xf32>, vector<32x32xf32>, vector<8x32xf32> -> vector<8x32xf32>
    %252 = arith.addf %251, %18 : vector<8x32xf32>
    %cst_93 = arith.constant 0.000000e+00 : f32
    %253 = vector.broadcast %cst_93 : f32 to vector<8x32xf32>
    %254 = arith.maximumf %252, %253 : vector<8x32xf32>
    %cst_94 = arith.constant dense<0.000000e+00> : vector<8x32xf32>
    %255 = tpu.matmul %254, %5, %cst_94 {dimension_numbers = #tpu.dot_dimension_numbers<[1], [0], [0], [1], [0, 0, 1, 1], [], []>} : vector<8x32xf32>, vector<32x32xf32>, vector<8x32xf32> -> vector<8x32xf32>
    %256 = arith.addf %255, %21 : vector<8x32xf32>
    %257 = arith.addf %248, %256 : vector<8x32xf32>
    %cst_95 = arith.constant dense<0.000000e+00> : vector<8x32xf32>
    %258 = tpu.matmul %257, %6, %cst_95 {dimension_numbers = #tpu.dot_dimension_numbers<[1], [0], [0], [1], [0, 0, 1, 1], [], []>} : vector<8x32xf32>, vector<32x32xf32>, vector<8x32xf32> -> vector<8x32xf32>
    %259 = arith.addf %258, %24 : vector<8x32xf32>
    %260 = vector.extract_strided_slice %259 {offsets = [0, 0], sizes = [8, 8], strides = [1, 1]} : vector<8x32xf32> to vector<8x8xf32>
    %261 = vector.extract_strided_slice %259 {offsets = [0, 8], sizes = [8, 8], strides = [1, 1]} : vector<8x32xf32> to vector<8x8xf32>
    %262 = math.absf %261 : vector<8x8xf32>
    %cst_96 = arith.constant 0.000000e+00 : f32
    %263 = vector.broadcast %cst_96 : f32 to vector<8x8xf32>
    %264 = arith.subf %263, %262 : vector<8x8xf32>
    %265 = math.exp %264 : vector<8x8xf32>
    %266 = math.log1p %265 : vector<8x8xf32>
    %cst_97 = arith.constant 0.000000e+00 : f32
    %267 = vector.broadcast %cst_97 : f32 to vector<8x8xf32>
    %268 = arith.maximumf %261, %267 : vector<8x8xf32>
    %269 = arith.addf %266, %268 : vector<8x8xf32>
    %cst_98 = arith.constant 1.000000e-03 : f32
    %270 = vector.broadcast %cst_98 : f32 to vector<8x8xf32>
    %271 = arith.addf %269, %270 : vector<8x8xf32>
    %272 = tpu.reciprocal %271 {approx = true} : vector<8x8xf32> -> vector<8x8xf32>
    %273 = arith.mulf %271, %272 : vector<8x8xf32>
    %cst_99 = arith.constant 2.000000e+00 : f32
    %274 = vector.broadcast %cst_99 : f32 to vector<8x8xf32>
    %275 = arith.subf %274, %273 : vector<8x8xf32>
    %276 = arith.mulf %272, %275 : vector<8x8xf32>
    %277 = arith.subf %0, %260 : vector<8x8xf32>
    %278 = arith.mulf %277, %276 : vector<8x8xf32>
    %cst_100 = arith.constant dense<0.000000e+00> : vector<8x32xf32>
    %279 = tpu.matmul %278, %1, %cst_100 {dimension_numbers = #tpu.dot_dimension_numbers<[1], [0], [0], [1], [0, 0, 1, 1], [], []>} : vector<8x8xf32>, vector<8x32xf32>, vector<8x32xf32> -> vector<8x32xf32>
    %280 = arith.addf %279, %9 : vector<8x32xf32>
    %cst_101 = arith.constant 0.000000e+00 : f32
    %281 = vector.broadcast %cst_101 : f32 to vector<8x32xf32>
    %282 = arith.maximumf %280, %281 : vector<8x32xf32>
    %cst_102 = arith.constant dense<0.000000e+00> : vector<8x32xf32>
    %283 = tpu.matmul %282, %2, %cst_102 {dimension_numbers = #tpu.dot_dimension_numbers<[1], [0], [0], [1], [0, 0, 1, 1], [], []>} : vector<8x32xf32>, vector<32x32xf32>, vector<8x32xf32> -> vector<8x32xf32>
    %284 = arith.addf %283, %12 : vector<8x32xf32>
    %cst_103 = arith.constant 0.000000e+00 : f32
    %285 = vector.broadcast %cst_103 : f32 to vector<8x32xf32>
    %286 = arith.maximumf %284, %285 : vector<8x32xf32>
    %cst_104 = arith.constant dense<0.000000e+00> : vector<8x32xf32>
    %287 = tpu.matmul %286, %3, %cst_104 {dimension_numbers = #tpu.dot_dimension_numbers<[1], [0], [0], [1], [0, 0, 1, 1], [], []>} : vector<8x32xf32>, vector<32x32xf32>, vector<8x32xf32> -> vector<8x32xf32>
    %288 = arith.addf %287, %15 : vector<8x32xf32>
    %289 = arith.addf %280, %288 : vector<8x32xf32>
    %cst_105 = arith.constant 0.000000e+00 : f32
    %290 = vector.broadcast %cst_105 : f32 to vector<8x32xf32>
    %291 = arith.maximumf %289, %290 : vector<8x32xf32>
    %cst_106 = arith.constant dense<0.000000e+00> : vector<8x32xf32>
    %292 = tpu.matmul %291, %4, %cst_106 {dimension_numbers = #tpu.dot_dimension_numbers<[1], [0], [0], [1], [0, 0, 1, 1], [], []>} : vector<8x32xf32>, vector<32x32xf32>, vector<8x32xf32> -> vector<8x32xf32>
    %293 = arith.addf %292, %18 : vector<8x32xf32>
    %cst_107 = arith.constant 0.000000e+00 : f32
    %294 = vector.broadcast %cst_107 : f32 to vector<8x32xf32>
    %295 = arith.maximumf %293, %294 : vector<8x32xf32>
    %cst_108 = arith.constant dense<0.000000e+00> : vector<8x32xf32>
    %296 = tpu.matmul %295, %5, %cst_108 {dimension_numbers = #tpu.dot_dimension_numbers<[1], [0], [0], [1], [0, 0, 1, 1], [], []>} : vector<8x32xf32>, vector<32x32xf32>, vector<8x32xf32> -> vector<8x32xf32>
    %297 = arith.addf %296, %21 : vector<8x32xf32>
    %298 = arith.addf %289, %297 : vector<8x32xf32>
    %cst_109 = arith.constant dense<0.000000e+00> : vector<8x32xf32>
    %299 = tpu.matmul %298, %6, %cst_109 {dimension_numbers = #tpu.dot_dimension_numbers<[1], [0], [0], [1], [0, 0, 1, 1], [], []>} : vector<8x32xf32>, vector<32x32xf32>, vector<8x32xf32> -> vector<8x32xf32>
    %300 = arith.addf %299, %24 : vector<8x32xf32>
    %301 = vector.extract_strided_slice %300 {offsets = [0, 0], sizes = [8, 8], strides = [1, 1]} : vector<8x32xf32> to vector<8x8xf32>
    %302 = vector.extract_strided_slice %300 {offsets = [0, 8], sizes = [8, 8], strides = [1, 1]} : vector<8x32xf32> to vector<8x8xf32>
    %303 = math.absf %302 : vector<8x8xf32>
    %cst_110 = arith.constant 0.000000e+00 : f32
    %304 = vector.broadcast %cst_110 : f32 to vector<8x8xf32>
    %305 = arith.subf %304, %303 : vector<8x8xf32>
    %306 = math.exp %305 : vector<8x8xf32>
    %307 = math.log1p %306 : vector<8x8xf32>
    %cst_111 = arith.constant 0.000000e+00 : f32
    %308 = vector.broadcast %cst_111 : f32 to vector<8x8xf32>
    %309 = arith.maximumf %302, %308 : vector<8x8xf32>
    %310 = arith.addf %307, %309 : vector<8x8xf32>
    %cst_112 = arith.constant 1.000000e-03 : f32
    %311 = vector.broadcast %cst_112 : f32 to vector<8x8xf32>
    %312 = arith.addf %310, %311 : vector<8x8xf32>
    %313 = tpu.reciprocal %312 {approx = true} : vector<8x8xf32> -> vector<8x8xf32>
    %314 = arith.mulf %312, %313 : vector<8x8xf32>
    %cst_113 = arith.constant 2.000000e+00 : f32
    %315 = vector.broadcast %cst_113 : f32 to vector<8x8xf32>
    %316 = arith.subf %315, %314 : vector<8x8xf32>
    %317 = arith.mulf %313, %316 : vector<8x8xf32>
    %318 = arith.subf %0, %301 : vector<8x8xf32>
    %319 = arith.mulf %318, %317 : vector<8x8xf32>
    %c0_114 = arith.constant 0 : index
    %c0_115 = arith.constant 0 : index
    %320 = vector.load %arg4[%c0_114, %c0_115] : memref<8x8xf32, #tpu.memory_space<vmem>>, vector<8x8xf32>
    tpu.vector_store %arg4[%c0_114, %c0_115], %319 {strides = array<i32>} : memref<8x8xf32, #tpu.memory_space<vmem>>, vector<8x8xf32>,
    %321 = math.log %312 : vector<8x8xf32>
    %cst_116 = arith.constant dense<0.000000e+00> : vector<8xf32>
    %322 = vector.multi_reduction <add>, %321, %cst_116 [1] : vector<8x8xf32> to vector<8xf32>
    %323 = vector.shape_cast %322 : vector<8xf32> to vector<8x1xf32>
    %cst_117 = arith.constant 0.000000e+00 : f32
    %324 = vector.broadcast %cst_117 : f32 to vector<8x1xf32>
    %325 = arith.subf %324, %323 : vector<8x1xf32>
    %c0_118 = arith.constant 0 : index
    %c0_119 = arith.constant 0 : index
    %326 = vector.load %arg5[%c0_118, %c0_119] : memref<8x1xf32, #tpu.memory_space<vmem>>, vector<8x1xf32>
    tpu.vector_store %arg5[%c0_118, %c0_119], %325 {strides = array<i32>} : memref<8x1xf32, #tpu.memory_space<vmem>>, vector<8x1xf32>,
    return
  }
  func.func @transform_0(%arg0: i32) -> (i32, i32) {
    %c0_i32 = arith.constant 0 : i32
    %c0_i32_0 = arith.constant 0 : i32
    return %arg0, %c0_i32 : i32, i32
  }
  func.func @transform_1(%arg0: i32) -> (i32, i32) {
    %c0_i32 = arith.constant 0 : i32
    %c0_i32_0 = arith.constant 0 : i32
    %c0_i32_1 = arith.constant 0 : i32
    return %c0_i32, %c0_i32_0 : i32, i32
  }
  func.func @transform_2(%arg0: i32) -> (i32, i32) {
    %c0_i32 = arith.constant 0 : i32
    %c0_i32_0 = arith.constant 0 : i32
    %c0_i32_1 = arith.constant 0 : i32
    return %c0_i32, %c0_i32_0 : i32, i32
  }
  func.func @transform_3(%arg0: i32) -> (i32, i32) {
    %c0_i32 = arith.constant 0 : i32
    %c0_i32_0 = arith.constant 0 : i32
    return %arg0, %c0_i32 : i32, i32
  }
  func.func @transform_4(%arg0: i32) -> (i32, i32) {
    %c0_i32 = arith.constant 0 : i32
    %c0_i32_0 = arith.constant 0 : i32
    return %arg0, %c0_i32 : i32, i32
  }
}

</mosaic_0001>

<bundles_post_ra>
// kernel: tpu_custom_call.1
= control target key start
LH: loop header
LB: loop body
LE: loop exit
PB: predicated region body
PF: predicated region fallthrough
CT: control target
= control target key end

     0   :  { %v4161_v3 = vmov 0.0   ;;  %vm4162_vm0 = vmmov 0   ;;  %vm81_vm1 = vcmask 64512   ;;  %s4950_s0 = inlined_call_operand.vmem [shape: f32[8,8], index: 0, kind: input, shape index: {}]   ;;  %s4951_s1 = inlined_call_operand.vmem [shape: f32[168,32], index: 1, kind: input, shape index: {}]   ;;  %s4952_s2 = inlined_call_operand.vmem [shape: f32[8,32], index: 2, kind: input, shape index: {}]   ;;  %s4953_s3 = inlined_call_operand.hbm [shape: f32[8,8], index: 3, kind: output, shape index: {0}]   ;;  %s4954_s4 = inlined_call_operand.vmem [shape: f32[8,1], index: 4, kind: output, shape index: {1}]  }
   0x1   :  { %v4193_v0 = vld [vmem:[%s4951_s1] sm:$0xff]  ;;  %3643 = vmatprep.subr.mxu0 %v4161_v3  ;;  %3645 = vmatprep.mubr.msk.f32.mxu0 %vm4162_vm0, %v4161_v3 }
   0x2   :  { %v4198_v1 = vld [vmem:[%s4950_s0] sm:$0xff]  ;;  %3644 = vmatpush3.msra.mxu0 %v4193_v0  ;;  %3648 = vmatprep.subr.mxu1 %v4161_v3 }
   0x3   :  { %v3410_v2 = vld [vmem:[%s4952_s2 + $0x6] ss:$0 sm:$0xff]  ;;  %v3411_v4 = vld [vmem:[%s4952_s2 + $0x7] ss:$0 sm:$0xff] }
   0x4   :  { %v79_v5 = vsub.f32 %v4198_v1, %v3410_v2  ;;  %v4213_v6 = vld [vmem:[%s4951_s1 + $0x20] sm:$0xff] }
   0x5   :  { %10 = vsyncpa [#allocation3], 0  ;;  %3649 = vmatpush3.msra.mxu1 %v4213_v6  ;;  %3656 = vmatprep.mubr.msk.f32.mxu1 %vm4162_vm0, %v4161_v3  ;;  %v4228_v8 = vld [vmem:[%s4951_s1 + $0x18] sm:$0xff]  ;;  %v4235_v9 = vld [vmem:[%s4951_s1 + $0x10] sm:$0xff]  ;;  %vm156_vm2 = vcmask 261120   ;;  %s4163_s23 = smov 120  }
   0x6   :  { %v80_v7 = vmul.f32 %v3411_v4, %v79_v5  ;;  %3650 = vmatprep.subr.mxu1 %v4161_v3  ;;  %3659 = vmatprep.subr.mxu0 %v4161_v3  ;;  %v4242_v10 = vld [vmem:[%s4951_s1 + $0x8] sm:$0xff]  ;;  %v4248_v11 = vld [vmem:[%s4951_s1 + $0x40] sm:$0xff]  ;;  %v4265_v17 = vld [vmem:[%s4951_s1 + $0x38] sm:$0xff] }
   0x7   :  { %3651 = vmatpush3.msra.mxu1 %v4228_v8  ;;  %v4256_v12 = vld [vmem:[%s4952_s2] ss:$0 sm:$0xff]  ;;  %v4272_v18 = vld [vmem:[%s4951_s1 + $0x30] sm:$0xff]  ;;  %v4279_v19 = vld [vmem:[%s4951_s1 + $0x28] sm:$0xff] }
   0x8   :  { %3646 = vmatmul.mubr.msk.f32.vlgmr.msra.gmra.mxu0 %vm81_vm1, %v80_v7  ;;  %3652 = vmatprep.subr.mxu1 %v4161_v3  ;;  %v4286_v20 = vld [vmem:[%s4952_s2 + $0x1] ss:$0 sm:$0xff]  ;;  %v4302_v26 = vld [vmem:[%s4951_s1 + $0x58] sm:$0xff]  ;;  %v4309_v27 = vld [vmem:[%s4951_s1 + $0x50] sm:$0xff] }
   0x9   :  { %3667 = vmatprep.mubr.msk.f32.mxu0 %vm4162_vm0, %v4161_v3  ;;  %3653 = vmatpush3.msra.mxu1 %v4235_v9  ;;  %v4295_v25 = vld [vmem:[%s4951_s1 + $0x60] sm:$0xff]  ;;  %v4316_v28 = vld [vmem:[%s4951_s1 + $0x48] sm:$0xff]  ;;  %v4339_v36 = vld [vmem:[%s4951_s1 + $0x78] sm:$0xff] }
   0xa   :  { %3654 = vmatprep.subr.mxu1 %v4161_v3  ;;  %3660 = vmatpush3.msra.mxu0 %v4248_v11  ;;  %v4322_v29 = vld [vmem:[%s4951_s1 + $0x80] sm:$0xff]  ;;  %v4346_v37 = vld [vmem:[%s4951_s1 + $0x70] sm:$0xff]  ;;  %v4353_v38 = vld [vmem:[%s4951_s1 + $0x68] sm:$0xff] }
   0xb   :  { %3655 = vmatpush3.msra.mxu1 %v4242_v10  ;;  %3661 = vmatprep.subr.mxu0 %v4161_v3  ;;  %v4330_v30 = vld [vmem:[%s4952_s2 + $0x2] ss:$0 sm:$0xff]  ;;  %v4367_v40 = vld [vmem:[%s4952_s2 + $0x3] ss:$0 sm:$0xff]  ;;  %v4378_v45 = vld [vmem:[%s4951_s1 + $0x98] sm:$0xff] }
   0xc   :  { %3670 = vmatprep.subr.mxu1 %v4161_v3  ;;  %3662 = vmatpush3.msra.mxu0 %v4265_v17  ;;  %v4359_v39 = vld [vmem:[%s4951_s1 + $0xa0] sm:$0xff]  ;;  %v4385_v46 = vld [vmem:[%s4951_s1 + $0x90] sm:$0xff]  ;;  %v4392_v47 = vld [vmem:[%s4951_s1 + $0x88] sm:$0xff] }
   0xd   :  { %3663 = vmatprep.subr.mxu0 %v4161_v3  ;;  %v4399_v48 = vld [vmem:[%s4952_s2 + $0x4] ss:$0 sm:$0xff]  ;;  %v4416_v53 = vld [vmem:[%s4952_s2 + $0x5] ss:$0 sm:$0xff] }
   0xe   :  { %3664 = vmatpush3.msra.mxu0 %v4272_v18 }
   0xf   :  { %3665 = vmatprep.subr.mxu0 %v4161_v3 }
  0x10   :  { %3666 = vmatpush3.msra.mxu0 %v4279_v19 }
  0x11   :  { %3681 = vmatprep.subr.mxu0 %v4161_v3 }
  0xc8   :  { %v151_v13 = vpop.f32.mrf.mxu0 }
  0xc9   :  { %v152_v14 = vadd.f32 %v4256_v12, %v151_v13 }
  0xca   :  { %v3647_v15 = vpop.f32.mrf.mxu0 }
  0xcb   :  { %v155_v16 = vmax.f32 %v152_v14, 0.0 }
  0xcd   :  { %3657 = vmatmul.mubr.msk.f32.vlgmr.msra.gmra.mxu1 %vm156_vm2, %v155_v16 }
  0xce   :  { %3678 = vmatprep.mubr.msk.f32.mxu1 %vm4162_vm0, %v4161_v3  ;;  %3671 = vmatpush3.msra.mxu1 %v4295_v25 }
  0xcf   :  { %3672 = vmatprep.subr.mxu1 %v4161_v3 }
  0xd0   :  { %3673 = vmatpush3.msra.mxu1 %v4302_v26 }
  0xd1   :  { %3674 = vmatprep.subr.mxu1 %v4161_v3 }
  0xd2   :  { %3675 = vmatpush3.msra.mxu1 %v4309_v27 }
  0xd3   :  { %3676 = vmatprep.subr.mxu1 %v4161_v3 }
  0xd4   :  { %3677 = vmatpush3.msra.mxu1 %v4316_v28 }
  0xd5   :  { %3692 = vmatprep.subr.mxu1 %v4161_v3 }
 0x18d   :  { %v226_v21 = vpop.f32.mrf.mxu1 }
 0x18e   :  { %v227_v22 = vadd.f32 %v4286_v20, %v226_v21 }
 0x18f   :  { %v3658_v23 = vpop.f32.mrf.mxu1 }
 0x190   :  { %v230_v24 = vmax.f32 %v227_v22, 0.0 }
 0x192   :  { %3668 = vmatmul.mubr.msk.f32.vlgmr.msra.gmra.mxu0 %vm156_vm2, %v230_v24 }
 0x193   :  { %3689 = vmatprep.mubr.msk.f32.mxu0 %vm4162_vm0, %v4161_v3  ;;  %3682 = vmatpush3.msra.mxu0 %v4322_v29 }
 0x194   :  { %3683 = vmatprep.subr.mxu0 %v4161_v3 }
 0x195   :  { %3684 = vmatpush3.msra.mxu0 %v4339_v36 }
 0x196   :  { %3685 = vmatprep.subr.mxu0 %v4161_v3 }
 0x197   :  { %3686 = vmatpush3.msra.mxu0 %v4346_v37 }
 0x198   :  { %3687 = vmatprep.subr.mxu0 %v4161_v3 }
 0x199   :  { %3688 = vmatpush3.msra.mxu0 %v4353_v38 }
 0x19a   :  { %3703 = vmatprep.subr.mxu0 %v4161_v3 }
 0x252   :  { %v300_v31 = vpop.f32.mrf.mxu0 }
 0x253   :  { %v301_v32 = vadd.f32 %v4330_v30, %v300_v31 }
 0x254   :  { %v3669_v33 = vpop.f32.mrf.mxu0 }
 0x255   :  { %v304_v34 = vadd.f32 %v301_v32, %v152_v14 }
 0x257   :  { %v305_v35 = vmax.f32 %v304_v34, 0.0 }
 0x259   :  { %3679 = vmatmul.mubr.msk.f32.vlgmr.msra.gmra.mxu1 %vm156_vm2, %v305_v35 }
 0x25a   :  { %3700 = vmatprep.mubr.msk.f32.mxu1 %vm4162_vm0, %v4161_v3  ;;  %3693 = vmatpush3.msra.mxu1 %v4359_v39 }
 0x25b   :  { %3694 = vmatprep.subr.mxu1 %v4161_v3 }
 0x25c   :  { %3695 = vmatpush3.msra.mxu1 %v4378_v45 }
 0x25d   :  { %3696 = vmatprep.subr.mxu1 %v4161_v3 }
 0x25e   :  { %3697 = vmatpush3.msra.mxu1 %v4385_v46 }
 0x25f   :  { %3698 = vmatprep.subr.mxu1 %v4161_v3 }
 0x260   :  { %3699 = vmatpush3.msra.mxu1 %v4392_v47 }
 0x261   :  { %3719 = vmatprep.subr.mxu1 %v4161_v3 }
 0x319   :  { %v375_v41 = vpop.f32.mrf.mxu1 }
 0x31a   :  { %v376_v42 = vadd.f32 %v4367_v40, %v375_v41 }
 0x31b   :  { %v3680_v43 = vpop.f32.mrf.mxu1 }
 0x31c   :  { %v379_v44 = vmax.f32 %v376_v42, 0.0 }
 0x31e   :  { %3690 = vmatmul.mubr.msk.f32.vlgmr.msra.gmra.mxu0 %vm156_vm2, %v379_v44 }
 0x31f   :  { %3704 = vmatpush3.msra.mxu0 %v4193_v0  ;;  %3705 = vmatprep.mubr.msk.f32.mxu0 %vm4162_vm0, %v4161_v3 }
 0x320   :  { %3708 = vmatprep.subr.mxu0 %v4161_v3 }
 0x3de   :  { %v449_v49 = vpop.f32.mrf.mxu0 }
 0x3df   :  { %v450_v50 = vadd.f32 %v4399_v48, %v449_v49 }
 0x3e0   :  { %v3691_v51 = vpop.f32.mrf.mxu0 }
 0x3e1   :  { %v453_v52 = vadd.f32 %v450_v50, %v304_v34 }
 0x3e3   :  { %3701 = vmatmul.mubr.msk.f32.vlgmr.msra.gmra.mxu1 %vm156_vm2, %v453_v52 }
 0x3e4   :  { %3720 = vmatpush3.msra.mxu1 %v4248_v11  ;;  %3727 = vmatprep.mubr.msk.f32.mxu1 %vm4162_vm0, %v4161_v3 }
 0x3e5   :  { %3721 = vmatprep.subr.mxu1 %v4161_v3 }
 0x3e6   :  { %3722 = vmatpush3.msra.mxu1 %v4265_v17 }
 0x3e7   :  { %3723 = vmatprep.subr.mxu1 %v4161_v3 }
 0x3e8   :  { %3724 = vmatpush3.msra.mxu1 %v4272_v18 }
 0x3e9   :  { %3725 = vmatprep.subr.mxu1 %v4161_v3 }
 0x3ea   :  { %3726 = vmatpush3.msra.mxu1 %v4279_v19 }
 0x3eb   :  { %3741 = vmatprep.subr.mxu1 %v4161_v3 }
 0x4a3   :  { %v523_v54 = vpop.f32.mrf.mxu1 }
 0x4a4   :  { %v524_v55 = vadd.f32 %v4416_v53, %v523_v54 }
 0x4a5   :  { %v3702_v56 = vpop.f32.mrf.mxu1 }
 0x4a6   :  { %v527_v57 = vand.u32 2147483647, %v524_v55  ;;  %v540_v13 = vmax.f32 %v524_v55, 0.0  ;;  %v547_v31 = vsub.f32 %v4198_v1, %v524_v55 }
 0x4a8   :  { %v528_v58 = vsub.f32 0.0, %v527_v57 }
 0x4aa   :  { %v529_v59 = vmul.f32 1.442695, %v528_v58 }
 0x4ac   :  { %4067 = vpow2.f32 %v529_v59 }
 0x4b9   :  { %v4068_v60 = vpop.eup %4067 }
 0x4ba   :  { %v531_v61 = vadd.f32 1.0, %v4068_v60  ;;  %v534_v62 = vmul.f32 -0.5, %v4068_v60  ;;  %v537_v2 = vand.u32 2147483647, %v4068_v60 }
 0x4bc   :  { %4069 = vlog2.f32 %v531_v61  ;;  %v535_v63 = vadd.f32 1.0, %v534_v62  ;;  %vm538_vm3 = vcmp.lt.f32.partialorder %v537_v2, 0.0004427343 }
 0x4be   :  { %v536_v7 = vmul.f32 %v4068_v60, %v535_v63 }
 0x4c9   :  { %v4070_v4 = vpop.eup %4069 }
 0x4ca   :  { %v533_v5 = vmul.f32 0.6931472, %v4070_v4 }
 0x4cc   :  { %v539_v14 = vsel %vm538_vm3, %v536_v7, %v533_v5 }
 0x4cd   :  { %v541_v15 = vadd.f32 %v540_v13, %v539_v14 }
 0x4cf   :  { %v542_v16 = vadd.f32 0.001, %v541_v15 }
 0x4d1   :  { %4071 = vrcp.f32 %v542_v16 }
 0x4de   :  { %v4072_v21 = vpop.eup %4071 }
 0x4df   :  { %v544_v22 = vmul.f32 %v4072_v21, %v542_v16 }
 0x4e1   :  { %v545_v23 = vsub.f32 2.0, %v544_v22 }
 0x4e3   :  { %v546_v24 = vmul.f32 %v4072_v21, %v545_v23 }
 0x4e5   :  { %549 = vrot.lane.b32.xlu0 %v546_v24, %s4163_s23 }
 0x557   :  { %v550_v32 = vpop.permute.xlu0 %549 }
 0x558   :  { %v552_v33 = vmul.f32 %v550_v32, %v547_v31 }
 0x55a   :  { %3706 = vmatmul.mubr.msk.f32.vlgmr.msra.gmra.mxu0 %vm81_vm1, %v552_v33 }
 0x55b   :  { %3709 = vmatpush3.msra.mxu0 %v4213_v6  ;;  %3716 = vmatprep.mubr.msk.f32.mxu0 %vm4162_vm0, %v4161_v3 }
 0x55c   :  { %3710 = vmatprep.subr.mxu0 %v4161_v3 }
 0x55d   :  { %3711 = vmatpush3.msra.mxu0 %v4228_v8 }
 0x55e   :  { %3712 = vmatprep.subr.mxu0 %v4161_v3 }
 0x55f   :  { %3713 = vmatpush3.msra.mxu0 %v4235_v9 }
 0x560   :  { %3714 = vmatprep.subr.mxu0 %v4161_v3 }
 0x561   :  { %3715 = vmatpush3.msra.mxu0 %v4242_v10 }
 0x562   :  { %3730 = vmatprep.subr.mxu0 %v4161_v3 }
 0x61a   :  { %v622_v34 = vpop.f32.mrf.mxu0 }
 0x61b   :  { %v623_v35 = vadd.f32 %v4256_v12, %v622_v34 }
 0x61c   :  { %v3707_v41 = vpop.f32.mrf.mxu0 }
 0x61d   :  { %v626_v42 = vmax.f32 %v623_v35, 0.0 }
 0x61f   :  { %3717 = vmatmul.mubr.msk.f32.vlgmr.msra.gmra.mxu0 %vm156_vm2, %v626_v42 }
 0x620   :  { %3731 = vmatpush3.msra.mxu0 %v4295_v25  ;;  %3738 = vmatprep.mubr.msk.f32.mxu0 %vm4162_vm0, %v4161_v3 }
 0x621   :  { %3732 = vmatprep.subr.mxu0 %v4161_v3 }
 0x622   :  { %3733 = vmatpush3.msra.mxu0 %v4302_v26 }
 0x623   :  { %3734 = vmatprep.subr.mxu0 %v4161_v3 }
 0x624   :  { %3735 = vmatpush3.msra.mxu0 %v4309_v27 }
 0x625   :  { %3736 = vmatprep.subr.mxu0 %v4161_v3 }
 0x626   :  { %3737 = vmatpush3.msra.mxu0 %v4316_v28 }
 0x627   :  { %3752 = vmatprep.subr.mxu0 %v4161_v3 }
 0x6df   :  { %v696_v43 = vpop.f32.mrf.mxu0 }
 0x6e0   :  { %v697_v44 = vadd.f32 %v4286_v20, %v696_v43 }
 0x6e1   :  { %v3718_v49 = vpop.f32.mrf.mxu0 }
 0x6e2   :  { %v700_v50 = vmax.f32 %v697_v44, 0.0 }
 0x6e4   :  { %3728 = vmatmul.mubr.msk.f32.vlgmr.msra.gmra.mxu1 %vm156_vm2, %v700_v50 }
 0x6e5   :  { %3742 = vmatpush3.msra.mxu1 %v4322_v29  ;;  %3749 = vmatprep.mubr.msk.f32.mxu1 %vm4162_vm0, %v4161_v3 }
 0x6e6   :  { %3743 = vmatprep.subr.mxu1 %v4161_v3 }
 0x6e7   :  { %3744 = vmatpush3.msra.mxu1 %v4339_v36 }
 0x6e8   :  { %3745 = vmatprep.subr.mxu1 %v4161_v3 }
 0x6e9   :  { %3746 = vmatpush3.msra.mxu1 %v4346_v37 }
 0x6ea   :  { %3747 = vmatprep.subr.mxu1 %v4161_v3 }
 0x6eb   :  { %3748 = vmatpush3.msra.mxu1 %v4353_v38 }
 0x6ec   :  { %3768 = vmatprep.subr.mxu1 %v4161_v3 }
 0x7a4   :  { %v770_v51 = vpop.f32.mrf.mxu1 }
 0x7a5   :  { %v771_v52 = vadd.f32 %v4330_v30, %v770_v51 }
 0x7a6   :  { %v3729_v54 = vpop.f32.mrf.mxu1 }
 0x7a7   :  { %v774_v55 = vadd.f32 %v771_v52, %v623_v35 }
 0x7a9   :  { %v775_v56 = vmax.f32 %v774_v55, 0.0 }
 0x7ab   :  { %3739 = vmatmul.mubr.msk.f32.vlgmr.msra.gmra.mxu0 %vm156_vm2, %v775_v56 }
 0x7ac   :  { %3753 = vmatpush3.msra.mxu0 %v4359_v39  ;;  %3760 = vmatprep.mubr.msk.f32.mxu0 %vm4162_vm0, %v4161_v3 }
 0x7ad   :  { %3754 = vmatprep.subr.mxu0 %v4161_v3 }
 0x7ae   :  { %3755 = vmatpush3.msra.mxu0 %v4378_v45 }
 0x7af   :  { %3756 = vmatprep.subr.mxu0 %v4161_v3 }
 0x7b0   :  { %3757 = vmatpush3.msra.mxu0 %v4385_v46 }
 0x7b1   :  { %3758 = vmatprep.subr.mxu0 %v4161_v3 }
 0x7b2   :  { %3759 = vmatpush3.msra.mxu0 %v4392_v47 }
 0x7b3   :  { %3763 = vmatprep.subr.mxu0 %v4161_v3 }
 0x86b   :  { %v845_v57 = vpop.f32.mrf.mxu0 }
 0x86c   :  { %v846_v58 = vadd.f32 %v4367_v40, %v845_v57 }
 0x86d   :  { %v3740_v59 = vpop.f32.mrf.mxu0 }
 0x86e   :  { %v849_v60 = vmax.f32 %v846_v58, 0.0 }
 0x870   :  { %3750 = vmatmul.mubr.msk.f32.vlgmr.msra.gmra.mxu1 %vm156_vm2, %v849_v60 }
 0x871   :  { %3769 = vmatpush3.msra.mxu1 %v4213_v6  ;;  %3776 = vmatprep.mubr.msk.f32.mxu1 %vm4162_vm0, %v4161_v3 }
 0x872   :  { %3770 = vmatprep.subr.mxu1 %v4161_v3 }
 0x873   :  { %3771 = vmatpush3.msra.mxu1 %v4228_v8 }
 0x874   :  { %3772 = vmatprep.subr.mxu1 %v4161_v3 }
 0x875   :  { %3773 = vmatpush3.msra.mxu1 %v4235_v9 }
 0x876   :  { %3774 = vmatprep.subr.mxu1 %v4161_v3 }
 0x877   :  { %3775 = vmatpush3.msra.mxu1 %v4242_v10 }
 0x878   :  { %3790 = vmatprep.subr.mxu1 %v4161_v3 }
 0x930   :  { %v919_v61 = vpop.f32.mrf.mxu1 }
 0x931   :  { %v920_v62 = vadd.f32 %v4399_v48, %v919_v61 }
 0x932   :  { %v3751_v63 = vpop.f32.mrf.mxu1 }
 0x933   :  { %v923_v2 = vadd.f32 %v920_v62, %v774_v55 }
 0x935   :  { %3761 = vmatmul.mubr.msk.f32.vlgmr.msra.gmra.mxu0 %vm156_vm2, %v923_v2 }
 0x936   :  { %3764 = vmatpush3.msra.mxu0 %v4193_v0  ;;  %3765 = vmatprep.mubr.msk.f32.mxu0 %vm4162_vm0, %v4161_v3 }
 0x937   :  { %3779 = vmatprep.subr.mxu0 %v4161_v3 }
 0x9f5   :  { %v993_v4 = vpop.f32.mrf.mxu0 }
 0x9f6   :  { %v994_v5 = vadd.f32 %v4416_v53, %v993_v4 }
 0x9f7   :  { %v3762_v7 = vpop.f32.mrf.mxu0 }
 0x9f8   :  { %v997_v13 = vand.u32 2147483647, %v994_v5  ;;  %v1010_v34 = vmax.f32 %v994_v5, 0.0  ;;  %v1017_v51 = vsub.f32 %v4198_v1, %v994_v5 }
 0x9fa   :  { %v998_v14 = vsub.f32 0.0, %v997_v13 }
 0x9fc   :  { %v999_v15 = vmul.f32 1.442695, %v998_v14 }
 0x9fe   :  { %4073 = vpow2.f32 %v999_v15 }
 0xa0b   :  { %v4074_v16 = vpop.eup %4073 }
 0xa0c   :  { %v1001_v21 = vadd.f32 1.0, %v4074_v16  ;;  %v1004_v22 = vmul.f32 -0.5, %v4074_v16  ;;  %v1007_v24 = vand.u32 2147483647, %v4074_v16 }
 0xa0e   :  { %4075 = vlog2.f32 %v1001_v21  ;;  %v1005_v23 = vadd.f32 1.0, %v1004_v22  ;;  %vm1008_vm4 = vcmp.lt.f32.partialorder %v1007_v24, 0.0004427343 }
 0xa10   :  { %v1006_v33 = vmul.f32 %v4074_v16, %v1005_v23 }
 0xa1b   :  { %v4076_v31 = vpop.eup %4075 }
 0xa1c   :  { %v1003_v32 = vmul.f32 0.6931472, %v4076_v31 }
 0xa1e   :  { %v1009_v35 = vsel %vm1008_vm4, %v1006_v33, %v1003_v32 }
 0xa1f   :  { %v1011_v41 = vadd.f32 %v1010_v34, %v1009_v35 }
 0xa21   :  { %v1012_v42 = vadd.f32 0.001, %v1011_v41 }
 0xa23   :  { %4077 = vrcp.f32 %v1012_v42 }
 0xa30   :  { %v4078_v43 = vpop.eup %4077 }
 0xa31   :  { %v1014_v44 = vmul.f32 %v4078_v43, %v1012_v42 }
 0xa33   :  { %v1015_v49 = vsub.f32 2.0, %v1014_v44 }
 0xa35   :  { %v1016_v50 = vmul.f32 %v4078_v43, %v1015_v49 }
 0xa37   :  { %1019 = vrot.lane.b32.xlu0 %v1016_v50, %s4163_s23 }
 0xaa9   :  { %v1020_v52 = vpop.permute.xlu0 %1019 }
 0xaaa   :  { %v1022_v54 = vmul.f32 %v1020_v52, %v1017_v51 }
 0xaac   :  { %3766 = vmatmul.mubr.msk.f32.vlgmr.msra.gmra.mxu0 %vm81_vm1, %v1022_v54 }
 0xaad   :  { %3780 = vmatpush3.msra.mxu0 %v4248_v11  ;;  %3787 = vmatprep.mubr.msk.f32.mxu0 %vm4162_vm0, %v4161_v3 }
 0xaae   :  { %3781 = vmatprep.subr.mxu0 %v4161_v3 }
 0xaaf   :  { %3782 = vmatpush3.msra.mxu0 %v4265_v17 }
 0xab0   :  { %3783 = vmatprep.subr.mxu0 %v4161_v3 }
 0xab1   :  { %3784 = vmatpush3.msra.mxu0 %v4272_v18 }
 0xab2   :  { %3785 = vmatprep.subr.mxu0 %v4161_v3 }
 0xab3   :  { %3786 = vmatpush3.msra.mxu0 %v4279_v19 }
 0xab4   :  { %3801 = vmatprep.subr.mxu0 %v4161_v3 }
 0xb6c   :  { %v1092_v55 = vpop.f32.mrf.mxu0 }
 0xb6d   :  { %v1093_v56 = vadd.f32 %v4256_v12, %v1092_v55 }
 0xb6e   :  { %v3767_v57 = vpop.f32.mrf.mxu0 }
 0xb6f   :  { %v1096_v58 = vmax.f32 %v1093_v56, 0.0 }
 0xb71   :  { %3777 = vmatmul.mubr.msk.f32.vlgmr.msra.gmra.mxu1 %vm156_vm2, %v1096_v58 }
 0xb72   :  { %3791 = vmatpush3.msra.mxu1 %v4295_v25  ;;  %3798 = vmatprep.mubr.msk.f32.mxu1 %vm4162_vm0, %v4161_v3 }
 0xb73   :  { %3792 = vmatprep.subr.mxu1 %v4161_v3 }
 0xb74   :  { %3793 = vmatpush3.msra.mxu1 %v4302_v26 }
 0xb75   :  { %3794 = vmatprep.subr.mxu1 %v4161_v3 }
 0xb76   :  { %3795 = vmatpush3.msra.mxu1 %v4309_v27 }
 0xb77   :  { %3796 = vmatprep.subr.mxu1 %v4161_v3 }
 0xb78   :  { %3797 = vmatpush3.msra.mxu1 %v4316_v28 }
 0xb79   :  { %3812 = vmatprep.subr.mxu1 %v4161_v3 }
 0xc31   :  { %v1166_v59 = vpop.f32.mrf.mxu1 }
 0xc32   :  { %v1167_v60 = vadd.f32 %v4286_v20, %v1166_v59 }
 0xc33   :  { %v3778_v61 = vpop.f32.mrf.mxu1 }
 0xc34   :  { %v1170_v62 = vmax.f32 %v1167_v60, 0.0 }
 0xc36   :  { %3788 = vmatmul.mubr.msk.f32.vlgmr.msra.gmra.mxu0 %vm156_vm2, %v1170_v62 }
 0xc37   :  { %3802 = vmatpush3.msra.mxu0 %v4322_v29  ;;  %3809 = vmatprep.mubr.msk.f32.mxu0 %vm4162_vm0, %v4161_v3 }
 0xc38   :  { %3803 = vmatprep.subr.mxu0 %v4161_v3 }
 0xc39   :  { %3804 = vmatpush3.msra.mxu0 %v4339_v36 }
 0xc3a   :  { %3805 = vmatprep.subr.mxu0 %v4161_v3 }
 0xc3b   :  { %3806 = vmatpush3.msra.mxu0 %v4346_v37 }
 0xc3c   :  { %3807 = vmatprep.subr.mxu0 %v4161_v3 }
 0xc3d   :  { %3808 = vmatpush3.msra.mxu0 %v4353_v38 }
 0xc3e   :  { %3823 = vmatprep.subr.mxu0 %v4161_v3 }
 0xcf6   :  { %v1240_v63 = vpop.f32.mrf.mxu0 }
 0xcf7   :  { %v1241_v2 = vadd.f32 %v4330_v30, %v1240_v63 }
 0xcf8   :  { %v3789_v4 = vpop.f32.mrf.mxu0 }
 0xcf9   :  { %v1244_v5 = vadd.f32 %v1241_v2, %v1093_v56 }
 0xcfb   :  { %v1245_v7 = vmax.f32 %v1244_v5, 0.0 }
 0xcfd   :  { %3799 = vmatmul.mubr.msk.f32.vlgmr.msra.gmra.mxu1 %vm156_vm2, %v1245_v7 }
 0xcfe   :  { %3813 = vmatpush3.msra.mxu1 %v4359_v39  ;;  %3820 = vmatprep.mubr.msk.f32.mxu1 %vm4162_vm0, %v4161_v3 }
 0xcff   :  { %3814 = vmatprep.subr.mxu1 %v4161_v3 }
 0xd00   :  { %3815 = vmatpush3.msra.mxu1 %v4378_v45 }
 0xd01   :  { %3816 = vmatprep.subr.mxu1 %v4161_v3 }
 0xd02   :  { %3817 = vmatpush3.msra.mxu1 %v4385_v46 }
 0xd03   :  { %3818 = vmatprep.subr.mxu1 %v4161_v3 }
 0xd04   :  { %3819 = vmatpush3.msra.mxu1 %v4392_v47 }
 0xd05   :  { %3839 = vmatprep.subr.mxu1 %v4161_v3 }
 0xdbd   :  { %v1315_v13 = vpop.f32.mrf.mxu1 }
 0xdbe   :  { %v1316_v14 = vadd.f32 %v4367_v40, %v1315_v13 }
 0xdbf   :  { %v3800_v15 = vpop.f32.mrf.mxu1 }
 0xdc0   :  { %v1319_v16 = vmax.f32 %v1316_v14, 0.0 }
 0xdc2   :  { %3810 = vmatmul.mubr.msk.f32.vlgmr.msra.gmra.mxu0 %vm156_vm2, %v1319_v16 }
 0xdc3   :  { %3824 = vmatpush3.msra.mxu0 %v4193_v0  ;;  %3825 = vmatprep.mubr.msk.f32.mxu0 %vm4162_vm0, %v4161_v3 }
 0xdc4   :  { %3828 = vmatprep.subr.mxu0 %v4161_v3 }
 0xe82   :  { %v1389_v21 = vpop.f32.mrf.mxu0 }
 0xe83   :  { %v1390_v22 = vadd.f32 %v4399_v48, %v1389_v21 }
 0xe84   :  { %v3811_v23 = vpop.f32.mrf.mxu0 }
 0xe85   :  { %v1393_v24 = vadd.f32 %v1390_v22, %v1244_v5 }
 0xe87   :  { %3821 = vmatmul.mubr.msk.f32.vlgmr.msra.gmra.mxu1 %vm156_vm2, %v1393_v24 }
 0xe88   :  { %3840 = vmatpush3.msra.mxu1 %v4248_v11  ;;  %3847 = vmatprep.mubr.msk.f32.mxu1 %vm4162_vm0, %v4161_v3 }
 0xe89   :  { %3841 = vmatprep.subr.mxu1 %v4161_v3 }
 0xe8a   :  { %3842 = vmatpush3.msra.mxu1 %v4265_v17 }
 0xe8b   :  { %3843 = vmatprep.subr.mxu1 %v4161_v3 }
 0xe8c   :  { %3844 = vmatpush3.msra.mxu1 %v4272_v18 }
 0xe8d   :  { %3845 = vmatprep.subr.mxu1 %v4161_v3 }
 0xe8e   :  { %3846 = vmatpush3.msra.mxu1 %v4279_v19 }
 0xe8f   :  { %3861 = vmatprep.subr.mxu1 %v4161_v3 }
 0xf47   :  { %v1463_v31 = vpop.f32.mrf.mxu1 }
 0xf48   :  { %v1464_v32 = vadd.f32 %v4416_v53, %v1463_v31 }
 0xf49   :  { %v3822_v33 = vpop.f32.mrf.mxu1 }
 0xf4a   :  { %v1467_v34 = vand.u32 2147483647, %v1464_v32  ;;  %v1480_v55 = vmax.f32 %v1464_v32, 0.0  ;;  %v1487_v63 = vsub.f32 %v4198_v1, %v1464_v32 }
 0xf4c   :  { %v1468_v35 = vsub.f32 0.0, %v1467_v34 }
 0xf4e   :  { %v1469_v41 = vmul.f32 1.442695, %v1468_v35 }
 0xf50   :  { %4079 = vpow2.f32 %v1469_v41 }
 0xf5d   :  { %v4080_v42 = vpop.eup %4079 }
 0xf5e   :  { %v1471_v43 = vadd.f32 1.0, %v4080_v42  ;;  %v1474_v44 = vmul.f32 -0.5, %v4080_v42  ;;  %v1477_v50 = vand.u32 2147483647, %v4080_v42 }
 0xf60   :  { %4081 = vlog2.f32 %v1471_v43  ;;  %v1475_v49 = vadd.f32 1.0, %v1474_v44  ;;  %vm1478_vm5 = vcmp.lt.f32.partialorder %v1477_v50, 0.0004427343 }
 0xf62   :  { %v1476_v54 = vmul.f32 %v4080_v42, %v1475_v49 }
 0xf6d   :  { %v4082_v51 = vpop.eup %4081 }
 0xf6e   :  { %v1473_v52 = vmul.f32 0.6931472, %v4082_v51 }
 0xf70   :  { %v1479_v56 = vsel %vm1478_vm5, %v1476_v54, %v1473_v52 }
 0xf71   :  { %v1481_v57 = vadd.f32 %v1480_v55, %v1479_v56 }
 0xf73   :  { %v1482_v58 = vadd.f32 0.001, %v1481_v57 }
 0xf75   :  { %4083 = vrcp.f32 %v1482_v58 }
 0xf82   :  { %v4084_v59 = vpop.eup %4083 }
 0xf83   :  { %v1484_v60 = vmul.f32 %v4084_v59, %v1482_v58 }
 0xf85   :  { %v1485_v61 = vsub.f32 2.0, %v1484_v60 }
 0xf87   :  { %v1486_v62 = vmul.f32 %v4084_v59, %v1485_v61 }
 0xf89   :  { %1489 = vrot.lane.b32.xlu1 %v1486_v62, %s4163_s23 }
 0xffb   :  { %v1490_v2 = vpop.permute.xlu1 %1489 }
 0xffc   :  { %v1492_v4 = vmul.f32 %v1490_v2, %v1487_v63 }
 0xffe   :  { %3826 = vmatmul.mubr.msk.f32.vlgmr.msra.gmra.mxu0 %vm81_vm1, %v1492_v4 }
 0xfff   :  { %3829 = vmatpush3.msra.mxu0 %v4213_v6  ;;  %3836 = vmatprep.mubr.msk.f32.mxu0 %vm4162_vm0, %v4161_v3 }
0x1000   :  { %3830 = vmatprep.subr.mxu0 %v4161_v3 }
0x1001   :  { %3831 = vmatpush3.msra.mxu0 %v4228_v8 }
0x1002   :  { %3832 = vmatprep.subr.mxu0 %v4161_v3 }
0x1003   :  { %3833 = vmatpush3.msra.mxu0 %v4235_v9 }
0x1004   :  { %3834 = vmatprep.subr.mxu0 %v4161_v3 }
0x1005   :  { %3835 = vmatpush3.msra.mxu0 %v4242_v10 }
0x1006   :  { %3850 = vmatprep.subr.mxu0 %v4161_v3 }
0x10be   :  { %v1562_v5 = vpop.f32.mrf.mxu0 }
0x10bf   :  { %v1563_v7 = vadd.f32 %v4256_v12, %v1562_v5 }
0x10c0   :  { %v3827_v13 = vpop.f32.mrf.mxu0 }
0x10c1   :  { %v1566_v14 = vmax.f32 %v1563_v7, 0.0 }
0x10c3   :  { %3837 = vmatmul.mubr.msk.f32.vlgmr.msra.gmra.mxu0 %vm156_vm2, %v1566_v14 }
0x10c4   :  { %3851 = vmatpush3.msra.mxu0 %v4295_v25  ;;  %3858 = vmatprep.mubr.msk.f32.mxu0 %vm4162_vm0, %v4161_v3 }
0x10c5   :  { %3852 = vmatprep.subr.mxu0 %v4161_v3 }
0x10c6   :  { %3853 = vmatpush3.msra.mxu0 %v4302_v26 }
0x10c7   :  { %3854 = vmatprep.subr.mxu0 %v4161_v3 }
0x10c8   :  { %3855 = vmatpush3.msra.mxu0 %v4309_v27 }
0x10c9   :  { %3856 = vmatprep.subr.mxu0 %v4161_v3 }
0x10ca   :  { %3857 = vmatpush3.msra.mxu0 %v4316_v28 }
0x10cb   :  { %3872 = vmatprep.subr.mxu0 %v4161_v3 }
0x1183   :  { %v1636_v15 = vpop.f32.mrf.mxu0 }
0x1184   :  { %v1637_v16 = vadd.f32 %v4286_v20, %v1636_v15 }
0x1185   :  { %v3838_v21 = vpop.f32.mrf.mxu0 }
0x1186   :  { %v1640_v22 = vmax.f32 %v1637_v16, 0.0 }
0x1188   :  { %3848 = vmatmul.mubr.msk.f32.vlgmr.msra.gmra.mxu1 %vm156_vm2, %v1640_v22 }
0x1189   :  { %3862 = vmatpush3.msra.mxu1 %v4322_v29  ;;  %3869 = vmatprep.mubr.msk.f32.mxu1 %vm4162_vm0, %v4161_v3 }
0x118a   :  { %3863 = vmatprep.subr.mxu1 %v4161_v3 }
0x118b   :  { %3864 = vmatpush3.msra.mxu1 %v4339_v36 }
0x118c   :  { %3865 = vmatprep.subr.mxu1 %v4161_v3 }
0x118d   :  { %3866 = vmatpush3.msra.mxu1 %v4346_v37 }
0x118e   :  { %3867 = vmatprep.subr.mxu1 %v4161_v3 }
0x118f   :  { %3868 = vmatpush3.msra.mxu1 %v4353_v38 }
0x1190   :  { %3883 = vmatprep.subr.mxu1 %v4161_v3 }
0x1248   :  { %v1710_v23 = vpop.f32.mrf.mxu1 }
0x1249   :  { %v1711_v24 = vadd.f32 %v4330_v30, %v1710_v23 }
0x124a   :  { %v3849_v31 = vpop.f32.mrf.mxu1 }
0x124b   :  { %v1714_v32 = vadd.f32 %v1711_v24, %v1563_v7 }
0x124d   :  { %v1715_v33 = vmax.f32 %v1714_v32, 0.0 }
0x124f   :  { %3859 = vmatmul.mubr.msk.f32.vlgmr.msra.gmra.mxu0 %vm156_vm2, %v1715_v33 }
0x1250   :  { %3873 = vmatpush3.msra.mxu0 %v4359_v39  ;;  %3880 = vmatprep.mubr.msk.f32.mxu0 %vm4162_vm0, %v4161_v3 }
0x1251   :  { %3874 = vmatprep.subr.mxu0 %v4161_v3 }
0x1252   :  { %3875 = vmatpush3.msra.mxu0 %v4378_v45 }
0x1253   :  { %3876 = vmatprep.subr.mxu0 %v4161_v3 }
0x1254   :  { %3877 = vmatpush3.msra.mxu0 %v4385_v46 }
0x1255   :  { %3878 = vmatprep.subr.mxu0 %v4161_v3 }
0x1256   :  { %3879 = vmatpush3.msra.mxu0 %v4392_v47 }
0x1257   :  { %3899 = vmatprep.subr.mxu0 %v4161_v3 }
0x130f   :  { %v1785_v34 = vpop.f32.mrf.mxu0 }
0x1310   :  { %v1786_v35 = vadd.f32 %v4367_v40, %v1785_v34 }
0x1311   :  { %v3860_v41 = vpop.f32.mrf.mxu0 }
0x1312   :  { %v1789_v42 = vmax.f32 %v1786_v35, 0.0 }
0x1314   :  { %3870 = vmatmul.mubr.msk.f32.vlgmr.msra.gmra.mxu1 %vm156_vm2, %v1789_v42 }
0x1315   :  { %3884 = vmatpush3.msra.mxu1 %v4193_v0  ;;  %3885 = vmatprep.mubr.msk.f32.mxu1 %vm4162_vm0, %v4161_v3 }
0x1316   :  { %3888 = vmatprep.subr.mxu1 %v4161_v3 }
0x13d4   :  { %v1859_v43 = vpop.f32.mrf.mxu1 }
0x13d5   :  { %v1860_v44 = vadd.f32 %v4399_v48, %v1859_v43 }
0x13d6   :  { %v3871_v49 = vpop.f32.mrf.mxu1 }
0x13d7   :  { %v1863_v50 = vadd.f32 %v1860_v44, %v1714_v32 }
0x13d9   :  { %3881 = vmatmul.mubr.msk.f32.vlgmr.msra.gmra.mxu0 %vm156_vm2, %v1863_v50 }
0x13da   :  { %3900 = vmatpush3.msra.mxu0 %v4248_v11  ;;  %3907 = vmatprep.mubr.msk.f32.mxu0 %vm4162_vm0, %v4161_v3 }
0x13db   :  { %3901 = vmatprep.subr.mxu0 %v4161_v3 }
0x13dc   :  { %3902 = vmatpush3.msra.mxu0 %v4265_v17 }
0x13dd   :  { %3903 = vmatprep.subr.mxu0 %v4161_v3 }
0x13de   :  { %3904 = vmatpush3.msra.mxu0 %v4272_v18 }
0x13df   :  { %3905 = vmatprep.subr.mxu0 %v4161_v3 }
0x13e0   :  { %3906 = vmatpush3.msra.mxu0 %v4279_v19 }
0x13e1   :  { %3921 = vmatprep.subr.mxu0 %v4161_v3 }
0x1499   :  { %v1933_v0 = vpop.f32.mrf.mxu0 }
0x149a   :  { %v1934_v51 = vadd.f32 %v4416_v53, %v1933_v0 }
0x149b   :  { %v3882_v52 = vpop.f32.mrf.mxu0 }
0x149c   :  { %v1937_v54 = vand.u32 2147483647, %v1934_v51  ;;  %v1950_v4 = vmax.f32 %v1934_v51, 0.0  ;;  %v1957_v22 = vsub.f32 %v4198_v1, %v1934_v51 }
0x149e   :  { %v1938_v55 = vsub.f32 0.0, %v1937_v54 }
0x14a0   :  { %v1939_v56 = vmul.f32 1.442695, %v1938_v55 }
0x14a2   :  { %4085 = vpow2.f32 %v1939_v56 }
0x14af   :  { %v4086_v57 = vpop.eup %4085 }
0x14b0   :  { %v1941_v58 = vadd.f32 1.0, %v4086_v57  ;;  %v1944_v59 = vmul.f32 -0.5, %v4086_v57  ;;  %v1947_v61 = vand.u32 2147483647, %v4086_v57 }
0x14b2   :  { %4087 = vlog2.f32 %v1941_v58  ;;  %v1945_v60 = vadd.f32 1.0, %v1944_v59  ;;  %vm1948_vm6 = vcmp.lt.f32.partialorder %v1947_v61, 0.0004427343  ;;  %v4707_v61 = vld [vmem:[%s4951_s1 + $0x20] sm:$0xff] }
0x14b4   :  { %v1946_v2 = vmul.f32 %v4086_v57, %v1945_v60  ;;  %v4700_v57 = vld [vmem:[%s4950_s0] sm:$0xff] }
0x14bf   :  { %v4088_v62 = vpop.eup %4087 }
0x14c0   :  { %v1943_v63 = vmul.f32 0.6931472, %v4088_v62  ;;  %v4716_v62 = vld [vmem:[%s4951_s1 + $0x18] sm:$0xff] }
0x14c2   :  { %v1949_v5 = vsel %vm1948_vm6, %v1946_v2, %v1943_v63  ;;  %v4723_v63 = vld [vmem:[%s4951_s1 + $0x10] sm:$0xff]  ;;  %v4730_v2 = vld [vmem:[%s4951_s1 + $0x8] sm:$0xff] }
0x14c3   :  { %v1951_v7 = vadd.f32 %v1950_v4, %v1949_v5  ;;  %v4737_v5 = vld [vmem:[%s4952_s2] ss:$0 sm:$0xff] }
0x14c5   :  { %v1952_v13 = vadd.f32 0.001, %v1951_v7 }
0x14c7   :  { %4089 = vrcp.f32 %v1952_v13 }
0x14d4   :  { %v4090_v14 = vpop.eup %4089 }
0x14d5   :  { %v1954_v15 = vmul.f32 %v4090_v14, %v1952_v13 }
0x14d7   :  { %v1955_v16 = vsub.f32 2.0, %v1954_v15  ;;  %v4744_v15 = vld [vmem:[%s4951_s1 + $0x60] sm:$0xff] }
0x14d9   :  { %v1956_v21 = vmul.f32 %v4090_v14, %v1955_v16  ;;  %v4753_v16 = vld [vmem:[%s4951_s1 + $0x58] sm:$0xff] }
0x14db   :  { %1959 = vrot.lane.b32.xlu1 %v1956_v21, %s4163_s23  ;;  %v4760_v21 = vld [vmem:[%s4951_s1 + $0x50] sm:$0xff] }
0x154d   :  { %v1960_v23 = vpop.permute.xlu1 %1959 }
0x154e   :  { %v1962_v24 = vmul.f32 %v1960_v23, %v1957_v22  ;;  %v4767_v22 = vld [vmem:[%s4951_s1 + $0x48] sm:$0xff] }
0x1550   :  { %3886 = vmatmul.mubr.msk.f32.vlgmr.msra.gmra.mxu1 %vm81_vm1, %v1962_v24  ;;  %v4774_v24 = vld [vmem:[%s4952_s2 + $0x1] ss:$0 sm:$0xff] }
0x1551   :  { %3889 = vmatpush3.msra.mxu1 %v4213_v6  ;;  %3896 = vmatprep.mubr.msk.f32.mxu1 %vm4162_vm0, %v4161_v3 }
0x1552   :  { %3890 = vmatprep.subr.mxu1 %v4161_v3 }
0x1553   :  { %3891 = vmatpush3.msra.mxu1 %v4228_v8 }
0x1554   :  { %3892 = vmatprep.subr.mxu1 %v4161_v3 }
0x1555   :  { %3893 = vmatpush3.msra.mxu1 %v4235_v9 }
0x1556   :  { %3894 = vmatprep.subr.mxu1 %v4161_v3 }
0x1557   :  { %3895 = vmatpush3.msra.mxu1 %v4242_v10 }
0x1558   :  { %3910 = vmatprep.subr.mxu1 %v4161_v3 }
0x1610   :  { %v2032_v1 = vpop.f32.mrf.mxu1 }
0x1611   :  { %v2033_v6 = vadd.f32 %v4256_v12, %v2032_v1 }
0x1612   :  { %v3887_v31 = vpop.f32.mrf.mxu1 }
0x1613   :  { %v2036_v32 = vmax.f32 %v2033_v6, 0.0 }
0x1615   :  { %3897 = vmatmul.mubr.msk.f32.vlgmr.msra.gmra.mxu1 %vm156_vm2, %v2036_v32  ;;  %v4781_v32 = vld [vmem:[%s4951_s1 + $0x80] sm:$0xff] }
0x1616   :  { %3911 = vmatpush3.msra.mxu1 %v4295_v25  ;;  %3918 = vmatprep.mubr.msk.f32.mxu1 %vm4162_vm0, %v4161_v3 }
0x1617   :  { %3912 = vmatprep.subr.mxu1 %v4161_v3 }
0x1618   :  { %3913 = vmatpush3.msra.mxu1 %v4302_v26 }
0x1619   :  { %3914 = vmatprep.subr.mxu1 %v4161_v3 }
0x161a   :  { %3915 = vmatpush3.msra.mxu1 %v4309_v27 }
0x161b   :  { %3916 = vmatprep.subr.mxu1 %v4161_v3 }
0x161c   :  { %3917 = vmatpush3.msra.mxu1 %v4316_v28 }
0x161d   :  { %3932 = vmatprep.subr.mxu1 %v4161_v3 }
0x16d5   :  { %v2106_v8 = vpop.f32.mrf.mxu1 }
0x16d6   :  { %v2107_v9 = vadd.f32 %v4286_v20, %v2106_v8  ;;  %v4790_v8 = vld [vmem:[%s4951_s1 + $0x78] sm:$0xff] }
0x16d7   :  { %v3898_v10 = vpop.f32.mrf.mxu1 }
0x16d8   :  { %v2110_v12 = vmax.f32 %v2107_v9, 0.0  ;;  %v4797_v9 = vld [vmem:[%s4951_s1 + $0x70] sm:$0xff]  ;;  %v4804_v10 = vld [vmem:[%s4951_s1 + $0x68] sm:$0xff] }
0x16da   :  { %3908 = vmatmul.mubr.msk.f32.vlgmr.msra.gmra.mxu0 %vm156_vm2, %v2110_v12 }
0x16db   :  { %3922 = vmatpush3.msra.mxu0 %v4322_v29  ;;  %3929 = vmatprep.mubr.msk.f32.mxu0 %vm4162_vm0, %v4161_v3 }
0x16dc   :  { %3923 = vmatprep.subr.mxu0 %v4161_v3 }
0x16dd   :  { %3924 = vmatpush3.msra.mxu0 %v4339_v36 }
0x16de   :  { %3925 = vmatprep.subr.mxu0 %v4161_v3 }
0x16df   :  { %3926 = vmatpush3.msra.mxu0 %v4346_v37 }
0x16e0   :  { %3927 = vmatprep.subr.mxu0 %v4161_v3 }
0x16e1   :  { %3928 = vmatpush3.msra.mxu0 %v4353_v38  ;;  %v4677_v38 = vld [vmem:[%s4951_s1] sm:$0xff] }
0x16e2   :  { %3943 = vmatprep.subr.mxu0 %v4161_v3 }
0x179a   :  { %v2180_v20 = vpop.f32.mrf.mxu0 }
0x179b   :  { %v2181_v25 = vadd.f32 %v4330_v30, %v2180_v20  ;;  %v4811_v20 = vld [vmem:[%s4952_s2 + $0x2] ss:$0 sm:$0xff] }
0x179c   :  { %v3909_v26 = vpop.f32.mrf.mxu0 }
0x179d   :  { %v2184_v27 = vadd.f32 %v2181_v25, %v2033_v6 }
0x179f   :  { %v2185_v28 = vmax.f32 %v2184_v27, 0.0 }
0x17a1   :  { %3919 = vmatmul.mubr.msk.f32.vlgmr.msra.gmra.mxu1 %vm156_vm2, %v2185_v28 }
0x17a2   :  { %3933 = vmatpush3.msra.mxu1 %v4359_v39  ;;  %3940 = vmatprep.mubr.msk.f32.mxu1 %vm4162_vm0, %v4161_v3 }
0x17a3   :  { %3934 = vmatprep.subr.mxu1 %v4161_v3 }
0x17a4   :  { %3935 = vmatpush3.msra.mxu1 %v4378_v45 }
0x17a5   :  { %3936 = vmatprep.subr.mxu1 %v4161_v3 }
0x17a6   :  { %3937 = vmatpush3.msra.mxu1 %v4385_v46 }
0x17a7   :  { %3938 = vmatprep.subr.mxu1 %v4161_v3 }
0x17a8   :  { %3939 = vmatpush3.msra.mxu1 %v4392_v47 }
0x17a9   :  { %3959 = vmatprep.subr.mxu1 %v4161_v3 }
0x1861   :  { %v2255_v29 = vpop.f32.mrf.mxu1 }
0x1862   :  { %v2256_v30 = vadd.f32 %v4367_v40, %v2255_v29  ;;  %v4818_v29 = vld [vmem:[%s4951_s1 + $0xa0] sm:$0xff] }
0x1863   :  { %v3920_v36 = vpop.f32.mrf.mxu1 }
0x1864   :  { %v2259_v37 = vmax.f32 %v2256_v30, 0.0  ;;  %v4827_v30 = vld [vmem:[%s4951_s1 + $0x98] sm:$0xff]  ;;  %v4834_v36 = vld [vmem:[%s4951_s1 + $0x90] sm:$0xff] }
0x1866   :  { %3930 = vmatmul.mubr.msk.f32.vlgmr.msra.gmra.mxu0 %vm156_vm2, %v2259_v37  ;;  %v4841_v37 = vld [vmem:[%s4951_s1 + $0x88] sm:$0xff] }
0x1867   :  { %3944 = vmatpush3.msra.mxu0 %v4677_v38  ;;  %3945 = vmatprep.mubr.msk.f32.mxu0 %vm4162_vm0, %v4161_v3 }
0x1868   :  { %3948 = vmatprep.subr.mxu0 %v4161_v3 }
0x1926   :  { %v2329_v39 = vpop.f32.mrf.mxu0 }
0x1927   :  { %v2330_v45 = vadd.f32 %v4399_v48, %v2329_v39 }
0x1928   :  { %v3931_v40 = vpop.f32.mrf.mxu0 }
0x1929   :  { %v2333_v46 = vadd.f32 %v2330_v45, %v2184_v27  ;;  %v4848_v45 = vld [vmem:[%s4952_s2 + $0x3] ss:$0 sm:$0xff] }
0x192b   :  { %3941 = vmatmul.mubr.msk.f32.vlgmr.msra.gmra.mxu1 %vm156_vm2, %v2333_v46 }
0x192c   :  { %3960 = vmatpush3.msra.mxu1 %v4248_v11  ;;  %3967 = vmatprep.mubr.msk.f32.mxu1 %vm4162_vm0, %v4161_v3 }
0x192d   :  { %3961 = vmatprep.subr.mxu1 %v4161_v3 }
0x192e   :  { %3962 = vmatpush3.msra.mxu1 %v4265_v17 }
0x192f   :  { %3963 = vmatprep.subr.mxu1 %v4161_v3 }
0x1930   :  { %3964 = vmatpush3.msra.mxu1 %v4272_v18 }
0x1931   :  { %3965 = vmatprep.subr.mxu1 %v4161_v3 }
0x1932   :  { %3966 = vmatpush3.msra.mxu1 %v4279_v19 }
0x1933   :  { %3981 = vmatprep.subr.mxu1 %v4161_v3 }
0x19eb   :  { %v2403_v47 = vpop.f32.mrf.mxu1 }
0x19ec   :  { %v2404_v11 = vadd.f32 %v4416_v53, %v2403_v47 }
0x19ed   :  { %v3942_v48 = vpop.f32.mrf.mxu1 }
0x19ee   :  { %v2407_v33 = vand.u32 2147483647, %v2404_v11  ;;  %v2420_v19 = vmax.f32 %v2404_v11, 0.0  ;;  %v2427_v58 = vsub.f32 %v4700_v57, %v2404_v11  ;;  %v4859_v48 = vld [vmem:[%s4952_s2 + $0x4] ss:$0 sm:$0xff] }
0x19f0   :  { %v2408_v34 = vsub.f32 0.0, %v2407_v33 }
0x19f2   :  { %v2409_v35 = vmul.f32 1.442695, %v2408_v34 }
0x19f4   :  { %4091 = vpow2.f32 %v2409_v35 }
0x1a01   :  { %v4092_v41 = vpop.eup %4091 }
0x1a02   :  { %v2411_v17 = vadd.f32 1.0, %v4092_v41  ;;  %v2414_v42 = vmul.f32 -0.5, %v4092_v41  ;;  %v2417_v18 = vand.u32 2147483647, %v4092_v41 }
0x1a04   :  { %4093 = vlog2.f32 %v2411_v17  ;;  %v2415_v43 = vadd.f32 1.0, %v2414_v42  ;;  %vm2418_vm7 = vcmp.lt.f32.partialorder %v2417_v18, 0.0004427343  ;;  %v4136_v17 = vld [vmem:[%s4951_s1 + $0x30] sm:$0xff]  ;;  %v4137_v42 = vld [vmem:[%s4951_s1 + $0x28] sm:$0xff] }
0x1a05   :  { %v4884_v18 = vld [vmem:[%s4952_s2 + $0x5] ss:$0 sm:$0xff] }
0x1a06   :  { %v2416_v50 = vmul.f32 %v4092_v41, %v2415_v43  ;;  %v4135_v41 = vld [vmem:[%s4951_s1 + $0x38] sm:$0xff] }
0x1a11   :  { %v4094_v44 = vpop.eup %4093 }
0x1a12   :  { %v2413_v49 = vmul.f32 0.6931472, %v4094_v44 }
0x1a14   :  { %v2419_v0 = vsel %vm2418_vm7, %v2416_v50, %v2413_v49 }
0x1a15   :  { %v2421_v51 = vadd.f32 %v2420_v19, %v2419_v0 }
0x1a17   :  { %v2422_v52 = vadd.f32 0.001, %v2421_v51 }
0x1a19   :  { %4095 = vrcp.f32 %v2422_v52 }
0x1a26   :  { %v4096_v53 = vpop.eup %4095 }
0x1a27   :  { %v2424_v54 = vmul.f32 %v4096_v53, %v2422_v52 }
0x1a29   :  { %v2425_v55 = vsub.f32 2.0, %v2424_v54 }
0x1a2b   :  { %v2426_v56 = vmul.f32 %v4096_v53, %v2425_v55 }
0x1a2d   :  { %2429 = vrot.lane.b32.xlu0 %v2426_v56, %s4163_s23 }
0x1a9f   :  { %v2430_v59 = vpop.permute.xlu0 %2429 }
0x1aa0   :  { %v2432_v60 = vmul.f32 %v2430_v59, %v2427_v58 }
0x1aa2   :  { %3946 = vmatmul.mubr.msk.f32.vlgmr.msra.gmra.mxu0 %vm81_vm1, %v2432_v60 }
0x1aa3   :  { %3949 = vmatpush3.msra.mxu0 %v4707_v61  ;;  %3956 = vmatprep.mubr.msk.f32.mxu0 %vm4162_vm0, %v4161_v3 }
0x1aa4   :  { %3950 = vmatprep.subr.mxu0 %v4161_v3 }
0x1aa5   :  { %3951 = vmatpush3.msra.mxu0 %v4716_v62 }
0x1aa6   :  { %3952 = vmatprep.subr.mxu0 %v4161_v3 }
0x1aa7   :  { %3953 = vmatpush3.msra.mxu0 %v4723_v63 }
0x1aa8   :  { %3954 = vmatprep.subr.mxu0 %v4161_v3 }
0x1aa9   :  { %3955 = vmatpush3.msra.mxu0 %v4730_v2 }
0x1aaa   :  { %3970 = vmatprep.subr.mxu0 %v4161_v3 }
0x1b62   :  { %v2502_v4 = vpop.f32.mrf.mxu0 }
0x1b63   :  { %v2503_v7 = vadd.f32 %v4737_v5, %v2502_v4 }
0x1b64   :  { %v3947_v13 = vpop.f32.mrf.mxu0 }
0x1b65   :  { %v2506_v14 = vmax.f32 %v2503_v7, 0.0 }
0x1b67   :  { %3957 = vmatmul.mubr.msk.f32.vlgmr.msra.gmra.mxu0 %vm156_vm2, %v2506_v14 }
0x1b68   :  { %3971 = vmatpush3.msra.mxu0 %v4744_v15  ;;  %3978 = vmatprep.mubr.msk.f32.mxu0 %vm4162_vm0, %v4161_v3 }
0x1b69   :  { %3972 = vmatprep.subr.mxu0 %v4161_v3 }
0x1b6a   :  { %3973 = vmatpush3.msra.mxu0 %v4753_v16 }
0x1b6b   :  { %3974 = vmatprep.subr.mxu0 %v4161_v3 }
0x1b6c   :  { %3975 = vmatpush3.msra.mxu0 %v4760_v21 }
0x1b6d   :  { %3976 = vmatprep.subr.mxu0 %v4161_v3 }
0x1b6e   :  { %3977 = vmatpush3.msra.mxu0 %v4767_v22 }
0x1b6f   :  { %3992 = vmatprep.subr.mxu0 %v4161_v3 }
0x1c27   :  { %v2576_v23 = vpop.f32.mrf.mxu0 }
0x1c28   :  { %v2577_v1 = vadd.f32 %v4774_v24, %v2576_v23 }
0x1c29   :  { %v3958_v6 = vpop.f32.mrf.mxu0 }
0x1c2a   :  { %v2580_v31 = vmax.f32 %v2577_v1, 0.0 }
0x1c2c   :  { %3968 = vmatmul.mubr.msk.f32.vlgmr.msra.gmra.mxu1 %vm156_vm2, %v2580_v31 }
0x1c2d   :  { %3982 = vmatpush3.msra.mxu1 %v4781_v32  ;;  %3989 = vmatprep.mubr.msk.f32.mxu1 %vm4162_vm0, %v4161_v3 }
0x1c2e   :  { %3983 = vmatprep.subr.mxu1 %v4161_v3 }
0x1c2f   :  { %3984 = vmatpush3.msra.mxu1 %v4790_v8 }
0x1c30   :  { %3985 = vmatprep.subr.mxu1 %v4161_v3 }
0x1c31   :  { %3986 = vmatpush3.msra.mxu1 %v4797_v9 }
0x1c32   :  { %3987 = vmatprep.subr.mxu1 %v4161_v3 }
0x1c33   :  { %3988 = vmatpush3.msra.mxu1 %v4804_v10 }
0x1c34   :  { %4003 = vmatprep.subr.mxu1 %v4161_v3 }
0x1cec   :  { %v2650_v12 = vpop.f32.mrf.mxu1 }
0x1ced   :  { %v2651_v25 = vadd.f32 %v4811_v20, %v2650_v12 }
0x1cee   :  { %v3969_v26 = vpop.f32.mrf.mxu1 }
0x1cef   :  { %v2654_v27 = vadd.f32 %v2651_v25, %v2503_v7 }
0x1cf1   :  { %v2655_v28 = vmax.f32 %v2654_v27, 0.0 }
0x1cf3   :  { %3979 = vmatmul.mubr.msk.f32.vlgmr.msra.gmra.mxu0 %vm156_vm2, %v2655_v28 }
0x1cf4   :  { %3993 = vmatpush3.msra.mxu0 %v4818_v29  ;;  %4000 = vmatprep.mubr.msk.f32.mxu0 %vm4162_vm0, %v4161_v3 }
0x1cf5   :  { %3994 = vmatprep.subr.mxu0 %v4161_v3 }
0x1cf6   :  { %3995 = vmatpush3.msra.mxu0 %v4827_v30 }
0x1cf7   :  { %3996 = vmatprep.subr.mxu0 %v4161_v3 }
0x1cf8   :  { %3997 = vmatpush3.msra.mxu0 %v4834_v36 }
0x1cf9   :  { %3998 = vmatprep.subr.mxu0 %v4161_v3 }
0x1cfa   :  { %3999 = vmatpush3.msra.mxu0 %v4841_v37 }
0x1cfb   :  { %4019 = vmatprep.subr.mxu0 %v4161_v3 }
0x1db3   :  { %v2725_v39 = vpop.f32.mrf.mxu0 }
0x1db4   :  { %v2726_v40 = vadd.f32 %v4848_v45, %v2725_v39 }
0x1db5   :  { %v3980_v46 = vpop.f32.mrf.mxu0 }
0x1db6   :  { %v2729_v47 = vmax.f32 %v2726_v40, 0.0 }
0x1db8   :  { %3990 = vmatmul.mubr.msk.f32.vlgmr.msra.gmra.mxu1 %vm156_vm2, %v2729_v47 }
0x1db9   :  { %4004 = vmatpush3.msra.mxu1 %v4677_v38  ;;  %4005 = vmatprep.mubr.msk.f32.mxu1 %vm4162_vm0, %v4161_v3  ;;  %v4134_v38 = vld [vmem:[%s4951_s1 + $0x40] sm:$0xff]  ;;  %s4164_s1 = smov [#allocation2]  }
0x1dba   :  { %4008 = vmatprep.subr.mxu1 %v4161_v3  ;;  %s3392_s2 = sshll.u32 %s4164_s1, 4  ;;  %s3393_s2 = int_to_ptr.vmem [resolvable:$true] %s3392_s2 }
0x1dbb   :  { %s4139_s28 = scalar_lea.vmem %s3393_s2, 128  ;;  %p4144_p1 = scmp.lt.s32.totalorder %s3393_s2, %s3393_s2 }
0x1dbc   :  { %p4140_p0 = scmp.ne.s32.totalorder %s3393_s2, %s4139_s28  ;;  %p4145_p2 = scmp.lt.s32.totalorder %s4139_s28, %s4139_s28 }
0x1dbe   :  { %p4146_p3 = por %p4145_p2, %p4144_p1 }
0x1dc0   :  { %p4147_p4 = pnand %p4146_p3, %p4140_p0 }
0x1e78   :  { %v2799_v11 = vpop.f32.mrf.mxu1 }
0x1e79   :  { %v2800_v33 = vadd.f32 %v4859_v48, %v2799_v11 }
0x1e7a   :  { %v3991_v34 = vpop.f32.mrf.mxu1 }
0x1e7b   :  { %v2803_v35 = vadd.f32 %v2800_v33, %v2654_v27 }
0x1e7d   :  { %4001 = vmatmul.mubr.msk.f32.vlgmr.msra.gmra.mxu0 %vm156_vm2, %v2803_v35 }
0x1e7e   :  { %4020 = vmatpush3.msra.mxu0 %v4134_v38  ;;  %4027 = vmatprep.mubr.msk.f32.mxu0 %vm4162_vm0, %v4161_v3 }
0x1e7f   :  { %4021 = vmatprep.subr.mxu0 %v4161_v3 }
0x1e80   :  { %4022 = vmatpush3.msra.mxu0 %v4135_v41 }
0x1e81   :  { %4023 = vmatprep.subr.mxu0 %v4161_v3 }
0x1e82   :  { %4024 = vmatpush3.msra.mxu0 %v4136_v17 }
0x1e83   :  { %4025 = vmatprep.subr.mxu0 %v4161_v3 }
0x1e84   :  { %4026 = vmatpush3.msra.mxu0 %v4137_v42 }
0x1e85   :  { %4041 = vmatprep.subr.mxu0 %v4161_v3 }
0x1f3d   :  { %v2873_v43 = vpop.f32.mrf.mxu0 }
0x1f3e   :  { %v2874_v44 = vadd.f32 %v4884_v18, %v2873_v43 }
0x1f3f   :  { %v4002_v49 = vpop.f32.mrf.mxu0 }
0x1f40   :  { %v2877_v50 = vand.u32 2147483647, %v2874_v44  ;;  %v2890_v60 = vmax.f32 %v2874_v44, 0.0  ;;  %v2897_v31 = vsub.f32 %v4700_v57, %v2874_v44 }
0x1f42   :  { %v2878_v19 = vsub.f32 0.0, %v2877_v50 }
0x1f44   :  { %v2879_v0 = vmul.f32 1.442695, %v2878_v19 }
0x1f46   :  { %4097 = vpow2.f32 %v2879_v0 }
0x1f53   :  { %v4098_v51 = vpop.eup %4097 }
0x1f54   :  { %v2881_v52 = vadd.f32 1.0, %v4098_v51  ;;  %v2884_v53 = vmul.f32 -0.5, %v4098_v51  ;;  %v2887_v55 = vand.u32 2147483647, %v4098_v51 }
0x1f56   :  { %4099 = vlog2.f32 %v2881_v52  ;;  %v2885_v54 = vadd.f32 1.0, %v2884_v53  ;;  %vm2888_vm8 = vcmp.lt.f32.partialorder %v2887_v55, 0.0004427343 }
0x1f58   :  { %v2886_v59 = vmul.f32 %v4098_v51, %v2885_v54 }
0x1f63   :  { %v4100_v56 = vpop.eup %4099 }
0x1f64   :  { %v2883_v58 = vmul.f32 0.6931472, %v4100_v56 }
0x1f66   :  { %v2889_v4 = vsel %vm2888_vm8, %v2886_v59, %v2883_v58 }
0x1f67   :  { %v2891_v7 = vadd.f32 %v2890_v60, %v2889_v4 }
0x1f69   :  { %v2892_v13 = vadd.f32 0.001, %v2891_v7 }
0x1f6b   :  { %4101 = vrcp.f32 %v2892_v13 }
0x1f78   :  { %v4102_v14 = vpop.eup %4101 }
0x1f79   :  { %v2894_v23 = vmul.f32 %v4102_v14, %v2892_v13 }
0x1f7b   :  { %v2895_v1 = vsub.f32 2.0, %v2894_v23 }
0x1f7d   :  { %v2896_v6 = vmul.f32 %v4102_v14, %v2895_v1 }
0x1f7f   :  { %2899 = vrot.lane.b32.xlu1 %v2896_v6, %s4163_s23 }
0x1ff1   :  { %v2900_v12 = vpop.permute.xlu1 %2899 }
0x1ff2   :  { %v2902_v25 = vmul.f32 %v2900_v12, %v2897_v31 }
0x1ff4   :  { %4006 = vmatmul.mubr.msk.f32.vlgmr.msra.gmra.mxu1 %vm81_vm1, %v2902_v25 }
0x1ff5   :  { %4009 = vmatpush3.msra.mxu1 %v4707_v61  ;;  %4016 = vmatprep.mubr.msk.f32.mxu1 %vm4162_vm0, %v4161_v3 }
0x1ff6   :  { %4010 = vmatprep.subr.mxu1 %v4161_v3 }
0x1ff7   :  { %4011 = vmatpush3.msra.mxu1 %v4716_v62 }
0x1ff8   :  { %4012 = vmatprep.subr.mxu1 %v4161_v3 }
0x1ff9   :  { %4013 = vmatpush3.msra.mxu1 %v4723_v63 }
0x1ffa   :  { %4014 = vmatprep.subr.mxu1 %v4161_v3 }
0x1ffb   :  { %4015 = vmatpush3.msra.mxu1 %v4730_v2 }
0x1ffc   :  { %4030 = vmatprep.subr.mxu1 %v4161_v3 }
0x20b4   :  { %v2972_v26 = vpop.f32.mrf.mxu1 }
0x20b5   :  { %v2973_v61 = vadd.f32 %v4737_v5, %v2972_v26 }
0x20b6   :  { %v4007_v27 = vpop.f32.mrf.mxu1 }
0x20b7   :  { %v2976_v28 = vmax.f32 %v2973_v61, 0.0 }
0x20b9   :  { %4017 = vmatmul.mubr.msk.f32.vlgmr.msra.gmra.mxu1 %vm156_vm2, %v2976_v28 }
0x20ba   :  { %4031 = vmatpush3.msra.mxu1 %v4744_v15  ;;  %4038 = vmatprep.mubr.msk.f32.mxu1 %vm4162_vm0, %v4161_v3 }
0x20bb   :  { %4032 = vmatprep.subr.mxu1 %v4161_v3 }
0x20bc   :  { %4033 = vmatpush3.msra.mxu1 %v4753_v16 }
0x20bd   :  { %4034 = vmatprep.subr.mxu1 %v4161_v3 }
0x20be   :  { %4035 = vmatpush3.msra.mxu1 %v4760_v21 }
0x20bf   :  { %4036 = vmatprep.subr.mxu1 %v4161_v3 }
0x20c0   :  { %4037 = vmatpush3.msra.mxu1 %v4767_v22 }
0x20c1   :  { %4052 = vmatprep.subr.mxu1 %v4161_v3 }
0x2179   :  { %v3046_v62 = vpop.f32.mrf.mxu1 }
0x217a   :  { %v3047_v63 = vadd.f32 %v4774_v24, %v3046_v62 }
0x217b   :  { %v4018_v2 = vpop.f32.mrf.mxu1 }
0x217c   :  { %v3050_v5 = vmax.f32 %v3047_v63, 0.0 }
0x217e   :  { %4028 = vmatmul.mubr.msk.f32.vlgmr.msra.gmra.mxu0 %vm156_vm2, %v3050_v5 }
0x217f   :  { %4042 = vmatpush3.msra.mxu0 %v4781_v32  ;;  %4049 = vmatprep.mubr.msk.f32.mxu0 %vm4162_vm0, %v4161_v3 }
0x2180   :  { %4043 = vmatprep.subr.mxu0 %v4161_v3 }
0x2181   :  { %4044 = vmatpush3.msra.mxu0 %v4790_v8 }
0x2182   :  { %4045 = vmatprep.subr.mxu0 %v4161_v3 }
0x2183   :  { %4046 = vmatpush3.msra.mxu0 %v4797_v9 }
0x2184   :  { %4047 = vmatprep.subr.mxu0 %v4161_v3 }
0x2185   :  { %4048 = vmatpush3.msra.mxu0 %v4804_v10 }
0x223e   :  { %v3120_v15 = vpop.f32.mrf.mxu0 }
0x223f   :  { %v3121_v16 = vadd.f32 %v4811_v20, %v3120_v15 }
0x2240   :  { %v4029_v21 = vpop.f32.mrf.mxu0 }
0x2241   :  { %v3124_v22 = vadd.f32 %v3121_v16, %v2973_v61 }
0x2243   :  { %v3125_v24 = vmax.f32 %v3124_v22, 0.0 }
0x2245   :  { %4039 = vmatmul.mubr.msk.f32.vlgmr.msra.gmra.mxu1 %vm156_vm2, %v3125_v24 }
0x2246   :  { %4053 = vmatpush3.msra.mxu1 %v4818_v29  ;;  %4060 = vmatprep.mubr.msk.f32.mxu1 %vm4162_vm0, %v4161_v3 }
0x2247   :  { %4054 = vmatprep.subr.mxu1 %v4161_v3 }
0x2248   :  { %4055 = vmatpush3.msra.mxu1 %v4827_v30 }
0x2249   :  { %4056 = vmatprep.subr.mxu1 %v4161_v3 }
0x224a   :  { %4057 = vmatpush3.msra.mxu1 %v4834_v36 }
0x224b   :  { %4058 = vmatprep.subr.mxu1 %v4161_v3 }
0x224c   :  { %4059 = vmatpush3.msra.mxu1 %v4841_v37 }
0x2305   :  { %v3195_v32 = vpop.f32.mrf.mxu1 }
0x2306   :  { %v3196_v8 = vadd.f32 %v4848_v45, %v3195_v32 }
0x2307   :  { %v4040_v9 = vpop.f32.mrf.mxu1 }
0x2308   :  { %v3199_v10 = vmax.f32 %v3196_v8, 0.0 }
0x230a   :  { %4050 = vmatmul.mubr.msk.f32.vlgmr.msra.gmra.mxu0 %vm156_vm2, %v3199_v10 }
0x23ca   :  { %v3269_v20 = vpop.f32.mrf.mxu0 }
0x23cb   :  { %v3270_v29 = vadd.f32 %v4859_v48, %v3269_v20 }
0x23cc   :  { %v4051_v39 = vpop.f32.mrf.mxu0 }
0x23cd   :  { %v3273_v30 = vadd.f32 %v3270_v29, %v3124_v22 }
0x23cf   :  { %4061 = vmatmul.mubr.msk.f32.vlgmr.msra.gmra.mxu1 %vm156_vm2, %v3273_v30 }
0x248f   :  { %v3343_v40 = vpop.f32.mrf.mxu1 }
0x2490   :  { %v3344_v36 = vadd.f32 %v4884_v18, %v3343_v40 }
0x2491   :  { %v4062_v3 = vpop.f32.mrf.mxu1 }
0x2492   :  { %v3347_v46 = vand.u32 2147483647, %v3344_v36  ;;  %v3360_v17 = vmax.f32 %v3344_v36, 0.0  ;;  %v3367_v54 = vsub.f32 %v4700_v57, %v3344_v36 }
0x2494   :  { %v3348_v37 = vsub.f32 0.0, %v3347_v46 }
0x2496   :  { %v3349_v47 = vmul.f32 1.442695, %v3348_v37 }
0x2498   :  { %4103 = vpow2.f32 %v3349_v47 }
0x24a5   :  { %v4104_v45 = vpop.eup %4103 }
0x24a6   :  { %v3351_v11 = vadd.f32 1.0, %v4104_v45  ;;  %v3354_v33 = vmul.f32 -0.5, %v4104_v45  ;;  %v3357_v35 = vand.u32 2147483647, %v4104_v45 }
0x24a8   :  { %4105 = vlog2.f32 %v3351_v11  ;;  %v3355_v34 = vadd.f32 1.0, %v3354_v33  ;;  %vm3358_vm9 = vcmp.lt.f32.partialorder %v3357_v35, 0.0004427343 }
0x24aa   :  { %v3356_v41 = vmul.f32 %v4104_v45, %v3355_v34 }
0x24b5   :  { %v4106_v38 = vpop.eup %4105 }
0x24b6   :  { %v3353_v48 = vmul.f32 0.6931472, %v4106_v38 }
0x24b8   :  { %v3359_v42 = vsel %vm3358_vm9, %v3356_v41, %v3353_v48 }
0x24b9   :  { %v3361_v43 = vadd.f32 %v3360_v17, %v3359_v42 }
0x24bb   :  { %v3362_v44 = vadd.f32 0.001, %v3361_v43 }
0x24bd   :  { %4107 = vrcp.f32 %v3362_v44 }
0x24be   :  { %4109 = vlog2.f32 %v3362_v44 }
0x24ca   :  { %v4108_v18 = vpop.eup %4107 }
0x24cb   :  { %v4110_v49 = vpop.eup %4109  ;;  %v3364_v50 = vmul.f32 %v4108_v18, %v3362_v44 }
0x24cc   :  { %v3375_v19 = vmul.f32 0.6931472, %v4110_v49 }
0x24cd   :  { %v3365_v0 = vsub.f32 2.0, %v3364_v50 }
0x24ce   :  { %3377 = vrot.lane.b32.xlu0 %v3375_v19, %s4163_s23 }
0x24cf   :  { %v3366_v51 = vmul.f32 %v4108_v18, %v3365_v0 }
0x24d2   :  { %3369 = vrot.lane.b32.xlu0 %v3366_v51, %s4163_s23 }
0x2540   :  { %v3378_v52 = vpop.permute.xlu0 %3377 }
0x2541   :  { %v3380_v53 = vsel %vm81_vm1, %v3378_v52, 0.0 }
0x2542   :  { %3381 = vadd.xlane.f32.xlu1 %v3380_v53 }
0x2544   :  { %v3370_v55 = vpop.permute.xlu0 %3369 }
0x2545   :  { %v3372_v56 = vmul.f32 %v3370_v55, %v3367_v54 }
0x2547   :  { %3373 = vst.msk [vmem:[#allocation2] sm:$0xff] %vm81_vm1, %v3372_v56 }
0x2548   :  { %4150 = shalt.err (!%p4147_p4)
}
0x2549   :  { %3395 = dma.vmem_to_hbm [thread:$0]  %s3393_s2, 128, %s4953_s3, [#allocation3]   ;;  %vm3384_vm10 = vcmask 7168  }
0x25cb   :  { %v3382_v57 = vpop.xlane.xlu1 %3381 }
0x25cc   :  { %v3383_v58 = vsub.f32 0.0, %v3382_v57 }
0x25ce   :  { %3385 = vst.msk [vmem:[%s4954_s4] sm:$0xff] %vm3384_vm10, %v3383_v58 }
0x25cf   :  { %4159 = dma.done.wait [#allocation3], 128  }
0x25d0   :  { %4160 = vsyncadd [#allocation3], 4294967168 }
0x25d1   :  { %3403 = vsyncpa [#allocation3], 1 }

</bundles_post_ra>
